<compile_context>
chip_gen: v7x
topology: tpu7x:2x2x1
jax: 0.10.0
libtpu: 0.0.40
codegen_flags: <defaults>
</compile_context>

<pallas_src>
import functools

import jax
import jax.numpy as jnp
import numpy as np
from jax.experimental import pallas as pl
from jax.experimental.pallas import tpu as pltpu

BN_EPS = 1e-5


def _round_up(a: int, b: int) -> int:
    return (a + b - 1) // b * b


def _vmem_capacity_bytes() -> int:
    """Physical VMEM capacity (per TensorCore); conservative fallback."""
    try:
        return int(pltpu.get_tpu_info().vmem_capacity_bytes)
    except Exception:
        return 64 * 1024 * 1024  # v7x per-core size: safe lower bound


# ---------------------------------------------------------------------------
# Shared in-kernel helpers.
# ---------------------------------------------------------------------------
def _fold_bn_from_stats(stats, gamma, beta, n_valid):
    """stats = [[sum], [sumsq]] over the batch -> folded BN scale/shift."""
    inv_n = 1.0 / n_valid
    mu = stats[0:1, :] * inv_n
    var = jnp.maximum(stats[1:2, :] * inv_n - mu * mu, 0.0)
    scale = gamma * jax.lax.rsqrt(var + BN_EPS)      # EUP slot
    shift = beta - mu * scale
    return scale, shift


def _masked_rows(z, tile_idx, tile_m, n_valid, need_mask):
    if not need_mask:
        return z
    rows = tile_idx * tile_m + jax.lax.broadcasted_iota(jnp.int32, z.shape, 0)
    return jnp.where(rows < n_valid, z, 0.0)


def _accum_stats(s_ref, zm, is_first):
    @pl.when(is_first)
    def _():
        s_ref[...] = jnp.zeros_like(s_ref)

    s_ref[0:1, :] += jnp.sum(zm, axis=0, keepdims=True)
    s_ref[1:2, :] += jnp.sum(zm * zm, axis=0, keepdims=True)


# ---------------------------------------------------------------------------
# Fused single-call kernel (small / moderate batches: everything in VMEM).
# ---------------------------------------------------------------------------
def _fused_mlp_kernel(x_ref, w1_ref, g1_ref, be1_ref, w2_ref, g2_ref, be2_ref,
                      w3_ref, b3_ref, o_ref, *, n_valid):
    need_mask = x_ref.shape[0] != n_valid
    inv_n = 1.0 / n_valid

    def bn_relu(z, g, beta):
        zm = z
        if need_mask:
            rows = jax.lax.broadcasted_iota(jnp.int32, z.shape, 0)
            zm = jnp.where(rows < n_valid, z, 0.0)
        mu = jnp.sum(zm, axis=0, keepdims=True) * inv_n
        var = jnp.maximum(
            jnp.sum(zm * zm, axis=0, keepdims=True) * inv_n - mu * mu, 0.0)
        scale = g * jax.lax.rsqrt(var + BN_EPS)       # EUP
        shift = beta - mu * scale
        return jnp.maximum(z * scale + shift, 0.0)    # folded affine + ReLU

    z1 = jnp.dot(x_ref[...], w1_ref[...], preferred_element_type=jnp.float32)
    h1 = bn_relu(z1, g1_ref[...], be1_ref[...])
    z2 = jnp.dot(h1.astype(w2_ref.dtype), w2_ref[...],
                 preferred_element_type=jnp.float32)
    h2 = bn_relu(z2, g2_ref[...], be2_ref[...])
    out = jnp.dot(h2.astype(w3_ref.dtype), w3_ref[...],
                  preferred_element_type=jnp.float32) + b3_ref[...]
    o_ref[...] = out.astype(o_ref.dtype)


# ---------------------------------------------------------------------------
# Batch-tiled path: 3 pipelined kernels, recompute-from-x, VMEM stats accum.
# ---------------------------------------------------------------------------
def _stats1_kernel(x_ref, w1_ref, s1_ref, *, tile_m, n_valid, need_mask):
    i = pl.program_id(0)
    z1 = jnp.dot(x_ref[...], w1_ref[...], preferred_element_type=jnp.float32)
    zm = _masked_rows(z1, i, tile_m, n_valid, need_mask)
    _accum_stats(s1_ref, zm, i == 0)


def _stats2_kernel(x_ref, w1_ref, g1_ref, be1_ref, s1_ref, w2_ref, s2_ref, *,
                   tile_m, n_valid, need_mask):
    i = pl.program_id(0)
    scale1, shift1 = _fold_bn_from_stats(s1_ref[...], g1_ref[...],
                                         be1_ref[...], n_valid)
    z1 = jnp.dot(x_ref[...], w1_ref[...], preferred_element_type=jnp.float32)
    h1 = jnp.maximum(z1 * scale1 + shift1, 0.0)
    z2 = jnp.dot(h1.astype(w2_ref.dtype), w2_ref[...],
                 preferred_element_type=jnp.float32)
    zm = _masked_rows(z2, i, tile_m, n_valid, need_mask)
    _accum_stats(s2_ref, zm, i == 0)


def _out_kernel(x_ref, w1_ref, g1_ref, be1_ref, s1_ref, w2_ref, g2_ref,
                be2_ref, s2_ref, w3_ref, b3_ref, o_ref, *, n_valid):
    scale1, shift1 = _fold_bn_from_stats(s1_ref[...], g1_ref[...],
                                         be1_ref[...], n_valid)
    scale2, shift2 = _fold_bn_from_stats(s2_ref[...], g2_ref[...],
                                         be2_ref[...], n_valid)
    z1 = jnp.dot(x_ref[...], w1_ref[...], preferred_element_type=jnp.float32)
    h1 = jnp.maximum(z1 * scale1 + shift1, 0.0)
    z2 = jnp.dot(h1.astype(w2_ref.dtype), w2_ref[...],
                 preferred_element_type=jnp.float32)
    h2 = jnp.maximum(z2 * scale2 + shift2, 0.0)
    out = jnp.dot(h2.astype(w3_ref.dtype), w3_ref[...],
                  preferred_element_type=jnp.float32) + b3_ref[...]
    o_ref[...] = out.astype(o_ref.dtype)


def _call_stats1(xb, w1, n, tile_m, nt, vmem_limit):
    in_dim = xb.shape[1]
    hid = w1.shape[1]
    kernel = functools.partial(_stats1_kernel, tile_m=tile_m, n_valid=n,
                               need_mask=(n % tile_m != 0))
    return pl.pallas_call(
        kernel,
        out_shape=jax.ShapeDtypeStruct((2, hid), jnp.float32),
        grid_spec=pltpu.PrefetchScalarGridSpec(
            num_scalar_prefetch=0,
            grid=(nt,),
            in_specs=[pl.BlockSpec((tile_m, in_dim), lambda i: (i, 0)),
                      pl.BlockSpec((in_dim, hid), lambda i: (0, 0))],
            out_specs=pl.BlockSpec((2, hid), lambda i: (0, 0))),
        compiler_params=pltpu.CompilerParams(
            dimension_semantics=("arbitrary",),
            vmem_limit_bytes=vmem_limit),
    )(xb, w1)


def _call_stats2(xb, w1, g1, be1, s1, w2, n, tile_m, nt, vmem_limit):
    in_dim = xb.shape[1]
    hid = w1.shape[1]
    kernel = functools.partial(_stats2_kernel, tile_m=tile_m, n_valid=n,
                               need_mask=(n % tile_m != 0))
    return pl.pallas_call(
        kernel,
        out_shape=jax.ShapeDtypeStruct((2, hid), jnp.float32),
        grid_spec=pltpu.PrefetchScalarGridSpec(
            num_scalar_prefetch=0,
            grid=(nt,),
            in_specs=[pl.BlockSpec((tile_m, in_dim), lambda i: (i, 0)),
                      pl.BlockSpec((in_dim, hid), lambda i: (0, 0)),
                      pl.BlockSpec((1, hid), lambda i: (0, 0)),
                      pl.BlockSpec((1, hid), lambda i: (0, 0)),
                      pl.BlockSpec((2, hid), lambda i: (0, 0)),
                      pl.BlockSpec((hid, hid), lambda i: (0, 0))],
            out_specs=pl.BlockSpec((2, hid), lambda i: (0, 0))),
        compiler_params=pltpu.CompilerParams(
            dimension_semantics=("arbitrary",),
            vmem_limit_bytes=vmem_limit),
    )(xb, w1, g1, be1, s1, w2)


def _call_out(xb, w1, g1, be1, s1, w2, g2, be2, s2, w3, b3, n, tile_m, nt,
              vmem_limit):
    in_dim = xb.shape[1]
    hid = w1.shape[1]
    out_pad = w3.shape[1]
    kernel = functools.partial(_out_kernel, n_valid=n)
    return pl.pallas_call(
        kernel,
        out_shape=jax.ShapeDtypeStruct((n, out_pad), jnp.float32),
        grid_spec=pltpu.PrefetchScalarGridSpec(
            num_scalar_prefetch=0,
            grid=(nt,),
            in_specs=[pl.BlockSpec((tile_m, in_dim), lambda i: (i, 0)),
                      pl.BlockSpec((in_dim, hid), lambda i: (0, 0)),
                      pl.BlockSpec((1, hid), lambda i: (0, 0)),
                      pl.BlockSpec((1, hid), lambda i: (0, 0)),
                      pl.BlockSpec((2, hid), lambda i: (0, 0)),
                      pl.BlockSpec((hid, hid), lambda i: (0, 0)),
                      pl.BlockSpec((1, hid), lambda i: (0, 0)),
                      pl.BlockSpec((1, hid), lambda i: (0, 0)),
                      pl.BlockSpec((2, hid), lambda i: (0, 0)),
                      pl.BlockSpec((hid, out_pad), lambda i: (0, 0)),
                      pl.BlockSpec((1, out_pad), lambda i: (0, 0))],
            out_specs=pl.BlockSpec((tile_m, out_pad), lambda i: (i, 0))),
        compiler_params=pltpu.CompilerParams(
            dimension_semantics=("parallel",),
            vmem_limit_bytes=vmem_limit),
    )(xb, w1, g1, be1, s1, w2, g2, be2, s2, w3, b3)


# ---------------------------------------------------------------------------
# Public forward.
# ---------------------------------------------------------------------------
@functools.partial(jax.jit, static_argnames=("block_m", "force_tiled"))
def mlp_forward(x, params, *, block_m=512, force_tiled=False):
    w1, b1, g1, be1, w2, b2, g2, be2, w3, b3 = params
    del b1, b2  # pre-BN biases cancel against the batch-mean subtraction
    n, in_dim = x.shape
    hid = w1.shape[1]
    out_dim = w3.shape[1]

    # Lane-dense output: pad final projection to a multiple of 128 lanes.
    out_pad = _round_up(out_dim, 128)
    if out_pad != out_dim:
        w3 = jnp.pad(w3, ((0, 0), (0, out_pad - out_dim)))
        b3 = jnp.pad(b3, ((0, 0), (0, out_pad - out_dim)))

    # Activations DMA'd as bf16 (MXU input); BN / accumulation stays f32.
    xb = x.astype(jnp.bfloat16)

    # Generation-aware VMEM budgets (v5e/v6e: 128 MiB, v7x: 64 MiB per TC).
    cap = _vmem_capacity_bytes()
    vmem_limit = min(int(cap * 0.85), 112 * 1024 * 1024)

    param_bytes = sum(int(p.size) * p.dtype.itemsize
                      for p in (w1, g1, be1, w2, g2, be2, w3, b3))
    n8 = _round_up(n, 8)
    # Live set in the fused kernel: x + ~4 f32 (n, hid) activations + out slab.
    fused_bytes = (n8 * in_dim * 2 + 4 * n8 * hid * 4 + n8 * out_pad * 4
                   + param_bytes)

    if (not force_tiled) and fused_bytes <= int(cap * 0.6):
        # Single fused kernel: no intermediate HBM traffic, one launch.
        if n8 != n:
            xb = jnp.pad(xb, ((0, n8 - n), (0, 0)))   # zero rows, masked stats
        vmem = pl.BlockSpec(memory_space=pltpu.MemorySpace.VMEM)
        kernel = functools.partial(_fused_mlp_kernel, n_valid=n)
        out = pl.pallas_call(
            kernel,
            out_shape=jax.ShapeDtypeStruct((n8, out_pad), jnp.float32),
            in_specs=[vmem] * 9,
            out_specs=vmem,
            compiler_params=pltpu.CompilerParams(vmem_limit_bytes=vmem_limit),
        )(xb, w1, g1, be1, w2, g2, be2, w3, b3)
        return out[:n, :out_dim]

    # Batch-tiled, pipelined path.  Tile size: big (amortize per-step cost),
    # but bounded by a per-tile activation budget and >= 2 grid steps so the
    # "parallel" batch axis can shard across both v7x TensorCores.
    act_row_bytes = 6 * hid * 4 + out_pad * 4
    tile_cap = max(8, ((vmem_limit // 4) // act_row_bytes) // 8 * 8)
    tile_m = min(block_m, tile_cap, _round_up((n + 1) // 2, 8))
    nt = pl.cdiv(n, tile_m)

    s1 = _call_stats1(xb, w1, n, tile_m, nt, vmem_limit)
    s2 = _call_stats2(xb, w1, g1, be1, s1, w2, n, tile_m, nt, vmem_limit)
    out = _call_out(xb, w1, g1, be1, s1, w2, g2, be2, s2, w3, b3, n, tile_m,
                    nt, vmem_limit)
    return out[:, :out_dim]


# ---------------------------------------------------------------------------
# Params / reference.
# ---------------------------------------------------------------------------
def init_params(key, in_dim, hid_dim, out_dim):
    """Shapes mirror the torch module; weights stored bf16 for the MXU."""
    ks = jax.random.split(key, 6)

    def lin(kw, kb, fan_in, fan_out):
        bound = 1.0 / np.sqrt(fan_in)
        w = jax.random.uniform(kw, (fan_in, fan_out), jnp.float32, -bound, bound)
        b = jax.random.uniform(kb, (1, fan_out), jnp.float32, -bound, bound)
        return w.astype(jnp.bfloat16), b

    w1, b1 = lin(ks[0], ks[1], in_dim, hid_dim)
    w2, b2 = lin(ks[2], ks[3], hid_dim, hid_dim)
    w3, b3 = lin(ks[4], ks[5], hid_dim, out_dim)
    # BatchNorm1d affine params (torch default init: gamma=1, beta=0).
    g1 = jnp.ones((1, hid_dim), jnp.float32)
    be1 = jnp.zeros((1, hid_dim), jnp.float32)
    g2 = jnp.ones((1, hid_dim), jnp.float32)
    be2 = jnp.zeros((1, hid_dim), jnp.float32)
    return (w1, b1, g1, be1, w2, b2, g2, be2, w3, b3)


def mlp_reference(x, params):
    """Pure-JAX f32 reference with the torch module's exact forward semantics."""
    w1, b1, g1, be1, w2, b2, g2, be2, w3, b3 = params

    def blk(h, w, b, g, beta):
        z = h @ w.astype(jnp.float32) + b
        mu = z.mean(0, keepdims=True)
        var = ((z - mu) ** 2).mean(0, keepdims=True)   # biased var (training BN)
        return jnp.maximum((z - mu) * jax.lax.rsqrt(var + BN_EPS) * g + beta, 0.0)

    h = blk(x, w1, b1, g1, be1)
    h = blk(h, w2, b2, g2, be2)
    return h @ w3.astype(jnp.float32) + b3


if __name__ == "__main__":
    key = jax.random.PRNGKey(0)
    kx, kp = jax.random.split(key)

    in_dim, hid_dim, out_dim = 16, 256, 32
    params = init_params(kp, in_dim, hid_dim, out_dim)

    x = jax.random.normal(kx, (200, in_dim), jnp.float32)
    ref = mlp_reference(x, params)

    # 1) Fused single-kernel path (everything VMEM-resident, one launch).
    out_fused = jax.block_until_ready(mlp_forward(x, params))
    np.testing.assert_allclose(np.asarray(out_fused), np.asarray(ref),
                               rtol=2e-2, atol=2e-2)

    # 2) Batch-tiled 3-kernel path (recompute-from-x, VMEM stats accumulators,
    #    ragged last tile masked).  Forced here so both paths are validated.
    out_tiled = jax.block_until_ready(
        mlp_forward(x, params, block_m=64, force_tiled=True))
    np.testing.assert_allclose(np.asarray(out_tiled), np.asarray(ref),
                               rtol=2e-2, atol=2e-2)

    print("KERNEL_OK")
</pallas_src>

<mosaic_0001>
module attributes {stable_mosaic.version = 11 : i64} {
  func.func @_fused_mlp_kernel(%arg0: memref<200x16xbf16, #tpu.memory_space<vmem>>, %arg1: memref<16x256xbf16, #tpu.memory_space<vmem>>, %arg2: memref<1x256xf32, #tpu.memory_space<vmem>>, %arg3: memref<1x256xf32, #tpu.memory_space<vmem>>, %arg4: memref<256x256xbf16, #tpu.memory_space<vmem>>, %arg5: memref<1x256xf32, #tpu.memory_space<vmem>>, %arg6: memref<1x256xf32, #tpu.memory_space<vmem>>, %arg7: memref<256x128xbf16, #tpu.memory_space<vmem>>, %arg8: memref<1x128xf32, #tpu.memory_space<vmem>>, %arg9: memref<200x128xf32, #tpu.memory_space<vmem>>) attributes {dimension_semantics = [], scalar_prefetch = 0 : i64, scratch_operands = 0 : i64, tpu.core_type = #tpu.core_type<tc>} {
    %c0 = arith.constant 0 : index
    %c0_0 = arith.constant 0 : index
    %0 = vector.load %arg0[%c0, %c0_0] : memref<200x16xbf16, #tpu.memory_space<vmem>>, vector<200x16xbf16>
    %c0_1 = arith.constant 0 : index
    %c0_2 = arith.constant 0 : index
    %1 = vector.load %arg1[%c0_1, %c0_2] : memref<16x256xbf16, #tpu.memory_space<vmem>>, vector<16x256xbf16>
    %cst = arith.constant dense<0.000000e+00> : vector<200x256xf32>
    %2 = tpu.matmul %0, %1, %cst {dimension_numbers = #tpu.dot_dimension_numbers<[1], [0], [0], [1], [0, 0, 1, 1], [], []>} : vector<200x16xbf16>, vector<16x256xbf16>, vector<200x256xf32> -> vector<200x256xf32>
    %c0_3 = arith.constant 0 : index
    %c0_4 = arith.constant 0 : index
    %3 = vector.load %arg2[%c0_3, %c0_4] : memref<1x256xf32, #tpu.memory_space<vmem>>, vector<1x256xf32>
    %c0_5 = arith.constant 0 : index
    %c0_6 = arith.constant 0 : index
    %4 = vector.load %arg3[%c0_5, %c0_6] : memref<1x256xf32, #tpu.memory_space<vmem>>, vector<1x256xf32>
    %cst_7 = arith.constant dense<0.000000e+00> : vector<256xf32>
    %5 = vector.multi_reduction <add>, %2, %cst_7 [0] : vector<200x256xf32> to vector<256xf32>
    %6 = vector.shape_cast %5 : vector<256xf32> to vector<1x256xf32>
    %cst_8 = arith.constant 5.000000e-03 : f32
    %7 = vector.broadcast %cst_8 : f32 to vector<1x256xf32>
    %8 = arith.mulf %6, %7 : vector<1x256xf32>
    %9 = arith.mulf %2, %2 : vector<200x256xf32>
    %cst_9 = arith.constant dense<0.000000e+00> : vector<256xf32>
    %10 = vector.multi_reduction <add>, %9, %cst_9 [0] : vector<200x256xf32> to vector<256xf32>
    %11 = vector.shape_cast %10 : vector<256xf32> to vector<1x256xf32>
    %cst_10 = arith.constant 5.000000e-03 : f32
    %12 = vector.broadcast %cst_10 : f32 to vector<1x256xf32>
    %13 = arith.mulf %11, %12 : vector<1x256xf32>
    %14 = arith.mulf %8, %8 : vector<1x256xf32>
    %15 = arith.subf %13, %14 : vector<1x256xf32>
    %cst_11 = arith.constant 0.000000e+00 : f32
    %16 = vector.broadcast %cst_11 : f32 to vector<1x256xf32>
    %17 = arith.maximumf %15, %16 : vector<1x256xf32>
    %cst_12 = arith.constant 9.99999974E-6 : f32
    %18 = vector.broadcast %cst_12 : f32 to vector<1x256xf32>
    %19 = arith.addf %17, %18 : vector<1x256xf32>
    %20 = math.rsqrt %19 : vector<1x256xf32>
    %21 = arith.mulf %3, %20 : vector<1x256xf32>
    %22 = arith.mulf %8, %21 : vector<1x256xf32>
    %23 = arith.subf %4, %22 : vector<1x256xf32>
    %24 = vector.broadcast %21 : vector<1x256xf32> to vector<200x256xf32>
    %25 = arith.mulf %2, %24 : vector<200x256xf32>
    %26 = vector.broadcast %23 : vector<1x256xf32> to vector<200x256xf32>
    %27 = arith.addf %25, %26 : vector<200x256xf32>
    %cst_13 = arith.constant 0.000000e+00 : f32
    %28 = vector.broadcast %cst_13 : f32 to vector<200x256xf32>
    %29 = arith.maximumf %27, %28 : vector<200x256xf32>
    %30 = arith.truncf %29 : vector<200x256xf32> to vector<200x256xbf16>
    %c0_14 = arith.constant 0 : index
    %c0_15 = arith.constant 0 : index
    %31 = vector.load %arg4[%c0_14, %c0_15] : memref<256x256xbf16, #tpu.memory_space<vmem>>, vector<256x256xbf16>
    %cst_16 = arith.constant dense<0.000000e+00> : vector<200x256xf32>
    %32 = tpu.matmul %30, %31, %cst_16 {dimension_numbers = #tpu.dot_dimension_numbers<[1], [0], [0], [1], [0, 0, 1, 1], [], []>} : vector<200x256xbf16>, vector<256x256xbf16>, vector<200x256xf32> -> vector<200x256xf32>
    %c0_17 = arith.constant 0 : index
    %c0_18 = arith.constant 0 : index
    %33 = vector.load %arg5[%c0_17, %c0_18] : memref<1x256xf32, #tpu.memory_space<vmem>>, vector<1x256xf32>
    %c0_19 = arith.constant 0 : index
    %c0_20 = arith.constant 0 : index
    %34 = vector.load %arg6[%c0_19, %c0_20] : memref<1x256xf32, #tpu.memory_space<vmem>>, vector<1x256xf32>
    %cst_21 = arith.constant dense<0.000000e+00> : vector<256xf32>
    %35 = vector.multi_reduction <add>, %32, %cst_21 [0] : vector<200x256xf32> to vector<256xf32>
    %36 = vector.shape_cast %35 : vector<256xf32> to vector<1x256xf32>
    %cst_22 = arith.constant 5.000000e-03 : f32
    %37 = vector.broadcast %cst_22 : f32 to vector<1x256xf32>
    %38 = arith.mulf %36, %37 : vector<1x256xf32>
    %39 = arith.mulf %32, %32 : vector<200x256xf32>
    %cst_23 = arith.constant dense<0.000000e+00> : vector<256xf32>
    %40 = vector.multi_reduction <add>, %39, %cst_23 [0] : vector<200x256xf32> to vector<256xf32>
    %41 = vector.shape_cast %40 : vector<256xf32> to vector<1x256xf32>
    %cst_24 = arith.constant 5.000000e-03 : f32
    %42 = vector.broadcast %cst_24 : f32 to vector<1x256xf32>
    %43 = arith.mulf %41, %42 : vector<1x256xf32>
    %44 = arith.mulf %38, %38 : vector<1x256xf32>
    %45 = arith.subf %43, %44 : vector<1x256xf32>
    %cst_25 = arith.constant 0.000000e+00 : f32
    %46 = vector.broadcast %cst_25 : f32 to vector<1x256xf32>
    %47 = arith.maximumf %45, %46 : vector<1x256xf32>
    %cst_26 = arith.constant 9.99999974E-6 : f32
    %48 = vector.broadcast %cst_26 : f32 to vector<1x256xf32>
    %49 = arith.addf %47, %48 : vector<1x256xf32>
    %50 = math.rsqrt %49 : vector<1x256xf32>
    %51 = arith.mulf %33, %50 : vector<1x256xf32>
    %52 = arith.mulf %38, %51 : vector<1x256xf32>
    %53 = arith.subf %34, %52 : vector<1x256xf32>
    %54 = vector.broadcast %51 : vector<1x256xf32> to vector<200x256xf32>
    %55 = arith.mulf %32, %54 : vector<200x256xf32>
    %56 = vector.broadcast %53 : vector<1x256xf32> to vector<200x256xf32>
    %57 = arith.addf %55, %56 : vector<200x256xf32>
    %cst_27 = arith.constant 0.000000e+00 : f32
    %58 = vector.broadcast %cst_27 : f32 to vector<200x256xf32>
    %59 = arith.maximumf %57, %58 : vector<200x256xf32>
    %60 = arith.truncf %59 : vector<200x256xf32> to vector<200x256xbf16>
    %c0_28 = arith.constant 0 : index
    %c0_29 = arith.constant 0 : index
    %61 = vector.load %arg7[%c0_28, %c0_29] : memref<256x128xbf16, #tpu.memory_space<vmem>>, vector<256x128xbf16>
    %cst_30 = arith.constant dense<0.000000e+00> : vector<200x128xf32>
    %62 = tpu.matmul %60, %61, %cst_30 {dimension_numbers = #tpu.dot_dimension_numbers<[1], [0], [0], [1], [0, 0, 1, 1], [], []>} : vector<200x256xbf16>, vector<256x128xbf16>, vector<200x128xf32> -> vector<200x128xf32>
    %c0_31 = arith.constant 0 : index
    %c0_32 = arith.constant 0 : index
    %63 = vector.load %arg8[%c0_31, %c0_32] : memref<1x128xf32, #tpu.memory_space<vmem>>, vector<1x128xf32>
    %64 = vector.broadcast %63 : vector<1x128xf32> to vector<200x128xf32>
    %65 = arith.addf %62, %64 : vector<200x128xf32>
    %c0_33 = arith.constant 0 : index
    %c0_34 = arith.constant 0 : index
    %66 = vector.load %arg9[%c0_33, %c0_34] : memref<200x128xf32, #tpu.memory_space<vmem>>, vector<200x128xf32>
    tpu.vector_store %arg9[%c0_33, %c0_34], %65 {strides = array<i32>} : memref<200x128xf32, #tpu.memory_space<vmem>>, vector<200x128xf32>,
    return
  }
}

</mosaic_0001>

<bundles_post_ra>
// kernel: mlp_forward.1
= control target key start
LH: loop header
LB: loop body
LE: loop exit
PB: predicated region body
PF: predicated region fallthrough
CT: control target
= control target key end

     0   :  { %v2098_v1 = vmov 0   ;;  %vm133_vm0 = vcmask 130048   ;;  %s3491_s1 = inlined_call_operand.vmem [shape: bf16[16,256], index: 1, kind: input, shape index: {}]   ;;  %s3492_s0 = inlined_call_operand.vmem [shape: bf16[200,16], index: 0, kind: input, shape index: {}]   ;;  %s3493_s4 = inlined_call_operand.vmem [shape: bf16[256,256], index: 4, kind: input, shape index: {}]   ;;  %s3494_s2 = inlined_call_operand.vmem [shape: f32[1,256], index: 2, kind: input, shape index: {}]   ;;  %s3495_s3 = inlined_call_operand.vmem [shape: f32[1,256], index: 3, kind: input, shape index: {}]   ;;  %s3496_s7 = inlined_call_operand.vmem [shape: bf16[256,128], index: 7, kind: input, shape index: {}]   ;;  %s3497_s5 = inlined_call_operand.vmem [shape: f32[1,256], index: 5, kind: input, shape index: {}]   ;;  %s3498_s6 = inlined_call_operand.vmem [shape: f32[1,256], index: 6, kind: input, shape index: {}]   ;;  %s3499_s8 = inlined_call_operand.vmem [shape: f32[1,128], index: 8, kind: input, shape index: {}]   ;;  %s3500_s9 = inlined_call_operand.vmem [shape: f32[200,128], index: 9, kind: output, shape index: {}]  }
   0x1   :  { %v2010_v0 = vld [vmem:[%s3491_s1 + $0x4] ss:$8 sps:$4 sm:$0xff]   ;;  %205 = vmatprep.mubr.bf16.mxu0 %v2098_v1  ;;  %255 = vmatprep.mubr.bf16.mxu1 %v2098_v1  ;;  %v2012_v2 = vld [vmem:[%s3491_s1] ss:$8 sps:$4 sm:$0xff]   ;;  %v2016_v6 = vld [vmem:[%s3492_s0 + $0x30] sm:$0xff]  }
   0x2   :  { %173 = vmatprep.subr.bf16.mxu0 %v2010_v0  ;;  %v2013_v3 = vld [vmem:[%s3492_s0] sm:$0xff]   ;;  %2006 = vmatprep.subr.bf16.mxu1 %v2010_v0  ;;  %v2014_v4 = vld [vmem:[%s3492_s0 + $0x28] sm:$0xff]   ;;  %v2017_v7 = vld [vmem:[%s3492_s0 + $0x10] sm:$0xff]  }
   0x3   :  { %174 = vmatpush1.bf16.msra.mxu0 %v2012_v2  ;;  %2007 = vmatpush1.bf16.msra.mxu1 %v2012_v2  ;;  %v2015_v5 = vld [vmem:[%s3492_s0 + $0x8] sm:$0xff]   ;;  %v2018_v8 = vld [vmem:[%s3492_s0 + $0x38] sm:$0xff]   ;;  %v2020_v10 = vld [vmem:[%s3492_s0 + $0x40] sm:$0xff]  }
   0x4   :  { %v2019_v9 = vld [vmem:[%s3492_s0 + $0x18] sm:$0xff]   ;;  %v2021_v11 = vld [vmem:[%s3492_s0 + $0x20] sm:$0xff]   ;;  %v2022_v12 = vld [vmem:[%s3492_s0 + $0x48] sm:$0xff]  }
   0x5   :  { %v2023_v13 = vld [vmem:[%s3492_s0 + $0x50] sm:$0xff]   ;;  %v2024_v14 = vld [vmem:[%s3492_s0 + $0x58] sm:$0xff]   ;;  %v2025_v15 = vld [vmem:[%s3492_s0 + $0x60] ss:$0 sps:$4 sm:$0xff]  }
   0x6   :  { %1850 = vmatmul.mubr.msk.bf16.vlgmr.msra.gmra.mrb[0].mxu0 %vm133_vm0, %v2013_v3  ;;  %1855 = vmatmul.mubr.msk.bf16.vlgmr.msra.gmra.mrb[0].mxu1 %vm133_vm0, %v2014_v4  ;;  %v2028_v16 = vld [vmem:[%s3493_s4 + $0x4] ss:$8 sps:$4 sm:$0xff]   ;;  %v2026_v17 = vld [vmem:[%s3493_s4] ss:$8 sps:$4 sm:$0xff]   ;;  %v2031_v18 = vld [vmem:[%s3493_s4 + $0x14] ss:$8 sps:$4 sm:$0xff]  }
   0x7   :  { %215 = vmatprep.mubr.bf16.mxu0 %v2098_v1  ;;  %265 = vmatprep.mubr.bf16.mxu1 %v2098_v1  ;;  %v2029_v19 = vld [vmem:[%s3493_s4 + $0x10] ss:$8 sps:$4 sm:$0xff]   ;;  %v2034_v20 = vld [vmem:[%s3493_s4 + $0x24] ss:$8 sps:$4 sm:$0xff]   ;;  %v2032_v21 = vld [vmem:[%s3493_s4 + $0x20] ss:$8 sps:$4 sm:$0xff]  }
   0x8   :  { %950 = vmatprep.subr.bf16.mxu1 %v2028_v16  ;;  %v2037_v22 = vld [vmem:[%s3493_s4 + $0x34] ss:$8 sps:$4 sm:$0xff]   ;;  %v2035_v23 = vld [vmem:[%s3493_s4 + $0x30] ss:$8 sps:$4 sm:$0xff]   ;;  %v2040_v24 = vld [vmem:[%s3493_s4 + $0x44] ss:$8 sps:$4 sm:$0xff]  }
   0x9   :  { %951 = vmatpush1.bf16.msra.mxu1 %v2026_v17  ;;  %v2038_v25 = vld [vmem:[%s3493_s4 + $0x40] ss:$8 sps:$4 sm:$0xff]   ;;  %v2043_v26 = vld [vmem:[%s3493_s4 + $0x54] ss:$8 sps:$4 sm:$0xff]   ;;  %v2041_v27 = vld [vmem:[%s3493_s4 + $0x50] ss:$8 sps:$4 sm:$0xff]  }
   0xa   :  { %952 = vmatprep.subr.bf16.mxu1 %v2031_v18  ;;  %v2046_v28 = vld [vmem:[%s3493_s4 + $0x64] ss:$8 sps:$4 sm:$0xff]   ;;  %v2044_v29 = vld [vmem:[%s3493_s4 + $0x60] ss:$8 sps:$4 sm:$0xff]   ;;  %v2049_v30 = vld [vmem:[%s3493_s4 + $0x74] ss:$8 sps:$4 sm:$0xff]  }
   0xb   :  { %v2047_v31 = vld [vmem:[%s3493_s4 + $0x70] ss:$8 sps:$4 sm:$0xff]   ;;  %v2052_v32 = vld [vmem:[%s3493_s4 + $0x84] ss:$8 sps:$4 sm:$0xff]   ;;  %v2050_v33 = vld [vmem:[%s3493_s4 + $0x80] ss:$8 sps:$4 sm:$0xff]  }
   0xc   :  { %v2055_v34 = vld [vmem:[%s3493_s4 + $0x94] ss:$8 sps:$4 sm:$0xff]   ;;  %v2053_v35 = vld [vmem:[%s3493_s4 + $0x90] ss:$8 sps:$4 sm:$0xff]   ;;  %v2058_v36 = vld [vmem:[%s3493_s4 + $0xa4] ss:$8 sps:$4 sm:$0xff]  }
   0xd   :  { %953 = vmatpush1.bf16.msra.mxu1 %v2029_v19  ;;  %v2056_v37 = vld [vmem:[%s3493_s4 + $0xa0] ss:$8 sps:$4 sm:$0xff]   ;;  %v2061_v38 = vld [vmem:[%s3493_s4 + $0xb4] ss:$8 sps:$4 sm:$0xff]   ;;  %v2059_v39 = vld [vmem:[%s3493_s4 + $0xb0] ss:$8 sps:$4 sm:$0xff]  }
   0xe   :  { %1851 = vmatmul.mubr.msk.bf16.gmra.mrb[4].mxu0 %vm133_vm0, %v2015_v5  ;;  %1856 = vmatmul.mubr.msk.bf16.gmra.mrb[4].mxu1 %vm133_vm0, %v2016_v6  ;;  %v2064_v40 = vld [vmem:[%s3493_s4 + $0xc4] ss:$8 sps:$4 sm:$0xff]   ;;  %v2062_v41 = vld [vmem:[%s3493_s4 + $0xc0] ss:$8 sps:$4 sm:$0xff]   ;;  %v2067_v42 = vld [vmem:[%s3493_s4 + $0xd4] ss:$8 sps:$4 sm:$0xff]  }
   0xf   :  { %225 = vmatprep.mubr.bf16.mxu0 %v2098_v1  ;;  %275 = vmatprep.mubr.bf16.mxu1 %v2098_v1  ;;  %v2065_v43 = vld [vmem:[%s3493_s4 + $0xd0] ss:$8 sps:$4 sm:$0xff]   ;;  %v2070_v44 = vld [vmem:[%s3493_s4 + $0xe4] ss:$8 sps:$4 sm:$0xff]   ;;  %v2068_v45 = vld [vmem:[%s3493_s4 + $0xe0] ss:$8 sps:$4 sm:$0xff]  }
  0x10   :  { %954 = vmatprep.subr.bf16.mxu1 %v2034_v20  ;;  %v2073_v46 = vld [vmem:[%s3493_s4 + $0xf4] ss:$8 sps:$4 sm:$0xff]   ;;  %v2071_v47 = vld [vmem:[%s3493_s4 + $0xf0] ss:$8 sps:$4 sm:$0xff]  }
  0x11   :  { %955 = vmatpush1.bf16.msra.mxu1 %v2032_v21 }
  0x12   :  { %956 = vmatprep.subr.bf16.mxu1 %v2037_v22 }
  0x15   :  { %957 = vmatpush1.bf16.msra.mxu1 %v2035_v23 }
  0x16   :  { %1852 = vmatmul.mubr.msk.bf16.gmra.mrb[8].mxu0 %vm133_vm0, %v2017_v7  ;;  %1857 = vmatmul.mubr.msk.bf16.gmra.mrb[8].mxu1 %vm133_vm0, %v2018_v8 }
  0x17   :  { %235 = vmatprep.mubr.bf16.mxu0 %v2098_v1  ;;  %285 = vmatprep.mubr.bf16.mxu1 %v2098_v1 }
  0x18   :  { %958 = vmatprep.subr.bf16.mxu1 %v2040_v24 }
  0x19   :  { %959 = vmatpush1.bf16.msra.mxu1 %v2038_v25 }
  0x1a   :  { %960 = vmatprep.subr.bf16.mxu1 %v2043_v26 }
  0x1d   :  { %961 = vmatpush1.bf16.msra.mxu1 %v2041_v27 }
  0x1e   :  { %1853 = vmatmul.mubr.msk.bf16.gmra.mrb[12].mxu0 %vm133_vm0, %v2019_v9  ;;  %1858 = vmatmul.mubr.msk.bf16.gmra.mrb[12].mxu1 %vm133_vm0, %v2020_v10 }
  0x1f   :  { %245 = vmatprep.mubr.bf16.mxu0 %v2098_v1  ;;  %295 = vmatprep.mubr.bf16.mxu1 %v2098_v1 }
  0x20   :  { %962 = vmatprep.subr.bf16.mxu1 %v2046_v28 }
  0x21   :  { %963 = vmatpush1.bf16.msra.mxu1 %v2044_v29 }
  0x22   :  { %964 = vmatprep.subr.bf16.mxu1 %v2049_v30 }
  0x25   :  { %965 = vmatpush1.bf16.msra.mxu1 %v2047_v31 }
  0x26   :  { %1854 = vmatmul.mubr.msk.bf16.gmra.mrb[16].mxu0 %vm133_vm0, %v2021_v11  ;;  %1859 = vmatmul.mubr.msk.bf16.gmra.mrb[16].mxu1 %vm133_vm0, %v2022_v12 }
  0x27   :  { %305 = vmatprep.mubr.bf16.mxu1 %v2098_v1  ;;  %966 = vmatprep.subr.bf16.mxu1 %v2052_v32 }
  0x29   :  { %967 = vmatpush1.bf16.msra.mxu1 %v2050_v33 }
  0x2a   :  { %968 = vmatprep.subr.bf16.mxu1 %v2055_v34 }
  0x2d   :  { %969 = vmatpush1.bf16.msra.mxu1 %v2053_v35 }
  0x2e   :  { %1860 = vmatmul.mubr.msk.bf16.gmra.mrb[20].mxu1 %vm133_vm0, %v2023_v13  ;;  %970 = vmatprep.subr.bf16.mxu1 %v2058_v36 }
  0x2f   :  { %315 = vmatprep.mubr.bf16.mxu1 %v2098_v1 }
  0x31   :  { %971 = vmatpush1.bf16.msra.mxu1 %v2056_v37 }
  0x32   :  { %972 = vmatprep.subr.bf16.mxu1 %v2061_v38 }
  0x35   :  { %973 = vmatpush1.bf16.msra.mxu1 %v2059_v39 }
  0x36   :  { %1861 = vmatmul.mubr.msk.bf16.gmra.mrb[24].mxu1 %vm133_vm0, %v2024_v14  ;;  %974 = vmatprep.subr.bf16.mxu1 %v2064_v40 }
  0x37   :  { %325 = vmatprep.mubr.bf16.mxu1 %v2098_v1 }
  0x39   :  { %975 = vmatpush1.bf16.msra.mxu1 %v2062_v41 }
  0x3a   :  { %976 = vmatprep.subr.bf16.mxu1 %v2067_v42 }
  0x3d   :  { %977 = vmatpush1.bf16.msra.mxu1 %v2065_v43 }
  0x3e   :  { %1862 = vmatmul.mubr.msk.bf16.gmra.mrb[28].mxu1 %vm133_vm0, %v2025_v15  ;;  %978 = vmatprep.subr.bf16.mxu1 %v2070_v44 }
  0x41   :  { %979 = vmatpush1.bf16.msra.mxu1 %v2068_v45 }
  0x42   :  { %980 = vmatprep.subr.bf16.mxu1 %v2073_v46 }
  0x45   :  { %981 = vmatpush1.bf16.msra.mxu1 %v2071_v47 }
  0xd9   :  { %v2304_v48 = vpop.f32.mrb[0].mxu0  ;;  %v2306_v49 = vpop.f32.mrb[0].mxu1 }
  0xda   :  { %v2308_v50 = vpop.f32.mrb[1].mxu0  ;;  %v2310_v51 = vpop.f32.mrb[1].mxu1  ;;  %v398_v54 = vmul.f32 %v2304_v48, %v2304_v48 }
  0xdb   :  { %v2312_v52 = vpop.f32.mrb[2].mxu0  ;;  %v2314_v53 = vpop.f32.mrb[2].mxu1  ;;  %v399_v59 = vmul.f32 %v2308_v50, %v2308_v50 }
  0xdc   :  { %v336_v55 = vadd.f32 %v2312_v52, %v2304_v48  ;;  %v400_v56 = vmul.f32 %v2312_v52, %v2312_v52  ;;  %v2322_v57 = vpop.f32.mrb[3].mxu0  ;;  %v2324_v58 = vpop.f32.mrb[3].mxu1 }
  0xdd   :  { %v366_v60 = vadd.f32 %v2322_v57, %v2308_v50  ;;  %v401_v61 = vmul.f32 %v2322_v57, %v2322_v57 }
  0xde   :  { %v448_v62 = vadd.f32 %v400_v56, %v398_v54 }
  0xdf   :  { %v478_v63 = vadd.f32 %v401_v61, %v399_v59 }
  0xe1   :  { %v2332_v0 = vpop.f32.mrb[4].mxu0  ;;  %v2334_v1 = vpop.f32.mrb[4].mxu1 }
  0xe2   :  { %v337_v2 = vadd.f32 %v336_v55, %v2332_v0  ;;  %v402_v3 = vmul.f32 %v2332_v0, %v2332_v0  ;;  %v2339_v4 = vpop.f32.mrb[5].mxu0  ;;  %v2341_v5 = vpop.f32.mrb[5].mxu1 }
  0xe3   :  { %v367_v6 = vadd.f32 %v366_v60, %v2339_v4  ;;  %v403_v7 = vmul.f32 %v2339_v4, %v2339_v4  ;;  %v2346_v8 = vpop.f32.mrb[6].mxu0  ;;  %v2348_v9 = vpop.f32.mrb[6].mxu1 }
  0xe4   :  { %v449_v10 = vadd.f32 %v448_v62, %v402_v3  ;;  %v338_v11 = vadd.f32 %v337_v2, %v2346_v8  ;;  %v404_v12 = vmul.f32 %v2346_v8, %v2346_v8  ;;  %v2353_v13 = vpop.f32.mrb[7].mxu0  ;;  %v2355_v14 = vpop.f32.mrb[7].mxu1 }
  0xe5   :  { %v479_v15 = vadd.f32 %v478_v63, %v403_v7  ;;  %v368_v16 = vadd.f32 %v367_v6, %v2353_v13  ;;  %v405_v17 = vmul.f32 %v2353_v13, %v2353_v13 }
  0xe6   :  { %v450_v18 = vadd.f32 %v449_v10, %v404_v12 }
  0xe7   :  { %v480_v19 = vadd.f32 %v479_v15, %v405_v17 }
  0xe9   :  { %v2360_v20 = vpop.f32.mrb[8].mxu0  ;;  %v2362_v21 = vpop.f32.mrb[8].mxu1 }
  0xea   :  { %v339_v22 = vadd.f32 %v338_v11, %v2360_v20  ;;  %v406_v23 = vmul.f32 %v2360_v20, %v2360_v20  ;;  %v2367_v24 = vpop.f32.mrb[9].mxu0  ;;  %v2369_v25 = vpop.f32.mrb[9].mxu1 }
  0xeb   :  { %v369_v26 = vadd.f32 %v368_v16, %v2367_v24  ;;  %v407_v27 = vmul.f32 %v2367_v24, %v2367_v24  ;;  %v2374_v28 = vpop.f32.mrb[10].mxu0  ;;  %v2376_v29 = vpop.f32.mrb[10].mxu1 }
  0xec   :  { %v451_v30 = vadd.f32 %v450_v18, %v406_v23  ;;  %v340_v31 = vadd.f32 %v339_v22, %v2374_v28  ;;  %v408_v32 = vmul.f32 %v2374_v28, %v2374_v28  ;;  %v2381_v33 = vpop.f32.mrb[11].mxu0  ;;  %v2383_v34 = vpop.f32.mrb[11].mxu1 }
  0xed   :  { %v481_v35 = vadd.f32 %v480_v19, %v407_v27  ;;  %v370_v36 = vadd.f32 %v369_v26, %v2381_v33  ;;  %v409_v37 = vmul.f32 %v2381_v33, %v2381_v33 }
  0xee   :  { %v452_v38 = vadd.f32 %v451_v30, %v408_v32 }
  0xef   :  { %v482_v39 = vadd.f32 %v481_v35, %v409_v37 }
  0xf1   :  { %v2388_v40 = vpop.f32.mrb[12].mxu0  ;;  %v2390_v41 = vpop.f32.mrb[12].mxu1 }
  0xf2   :  { %3530 = vst [vmem:[#allocation2_spill] sm:$0xff] %v2390_v41  ;;  %v341_v42 = vadd.f32 %v340_v31, %v2388_v40  ;;  %v410_v43 = vmul.f32 %v2388_v40, %v2388_v40  ;;  %v2395_v44 = vpop.f32.mrb[13].mxu0  ;;  %v2397_v45 = vpop.f32.mrb[13].mxu1 }
  0xf3   :  { %v371_v46 = vadd.f32 %v370_v36, %v2395_v44  ;;  %v411_v47 = vmul.f32 %v2395_v44, %v2395_v44  ;;  %v2402_v54 = vpop.f32.mrb[14].mxu0  ;;  %v2404_v55 = vpop.f32.mrb[14].mxu1 }
  0xf4   :  { %3531 = vst [vmem:[#allocation3_spill] sm:$0xff] %v2404_v55  ;;  %v453_v56 = vadd.f32 %v452_v38, %v410_v43  ;;  %v342_v59 = vadd.f32 %v341_v42, %v2402_v54  ;;  %v412_v60 = vmul.f32 %v2402_v54, %v2402_v54  ;;  %v2409_v61 = vpop.f32.mrb[15].mxu0  ;;  %v2411_v62 = vpop.f32.mrb[15].mxu1  ;;  %v418_v38 = vmul.f32 %v2306_v49, %v2306_v49 }
  0xf5   :  { %v483_v63 = vadd.f32 %v482_v39, %v411_v47  ;;  %v372_v2 = vadd.f32 %v371_v46, %v2409_v61  ;;  %v413_v3 = vmul.f32 %v2409_v61, %v2409_v61  ;;  %v419_v43 = vmul.f32 %v2310_v51, %v2310_v51 }
  0xf6   :  { %v454_v6 = vadd.f32 %v453_v56, %v412_v60  ;;  %v420_v56 = vmul.f32 %v2314_v53, %v2314_v53 }
  0xf7   :  { %v484_v7 = vadd.f32 %v483_v63, %v413_v3  ;;  %v421_v63 = vmul.f32 %v2324_v58, %v2324_v58 }
  0xf9   :  { %v2416_v10 = vpop.f32.mrb[16].mxu0  ;;  %v2418_v11 = vpop.f32.mrb[16].mxu1 }
  0xfa   :  { %3532 = vst [vmem:[#allocation4_spill] sm:$0xff] %v2418_v11  ;;  %v343_v12 = vadd.f32 %v342_v59, %v2416_v10  ;;  %v414_v15 = vmul.f32 %v2416_v10, %v2416_v10  ;;  %v2423_v16 = vpop.f32.mrb[17].mxu0  ;;  %v2425_v17 = vpop.f32.mrb[17].mxu1 }
  0xfb   :  { %v373_v18 = vadd.f32 %v372_v2, %v2423_v16  ;;  %v415_v19 = vmul.f32 %v2423_v16, %v2423_v16  ;;  %v2430_v22 = vpop.f32.mrb[18].mxu0  ;;  %v2432_v23 = vpop.f32.mrb[18].mxu1 }
  0xfc   :  { %3533 = vst [vmem:[#allocation5_spill] sm:$0xff] %v2432_v23  ;;  %v455_v26 = vadd.f32 %v454_v6, %v414_v15  ;;  %v344_v27 = vadd.f32 %v343_v12, %v2430_v22  ;;  %v416_v30 = vmul.f32 %v2430_v22, %v2430_v22  ;;  %v2437_v31 = vpop.f32.mrb[19].mxu0  ;;  %v2439_v32 = vpop.f32.mrb[19].mxu1 }
  0xfd   :  { %v485_v35 = vadd.f32 %v484_v7, %v415_v19  ;;  %v374_v36 = vadd.f32 %v373_v18, %v2437_v31  ;;  %v417_v37 = vmul.f32 %v2437_v31, %v2437_v31  ;;  %v422_v7 = vmul.f32 %v2334_v1, %v2334_v1 }
  0xfe   :  { %v345_v39 = vadd.f32 %v344_v27, %v2306_v49  ;;  %v456_v42 = vadd.f32 %v455_v26, %v416_v30  ;;  %v423_v19 = vmul.f32 %v2341_v5, %v2341_v5 }
  0xff   :  { %v375_v46 = vadd.f32 %v374_v36, %v2310_v51  ;;  %v486_v47 = vadd.f32 %v485_v35, %v417_v37  ;;  %v424_v35 = vmul.f32 %v2348_v9, %v2348_v9 }
 0x100   :  { %v346_v59 = vadd.f32 %v345_v39, %v2314_v53  ;;  %v457_v60 = vadd.f32 %v456_v42, %v418_v38  ;;  %v425_v39 = vmul.f32 %v2355_v14, %v2355_v14 }
 0x101   :  { %v376_v2 = vadd.f32 %v375_v46, %v2324_v58  ;;  %v487_v3 = vadd.f32 %v486_v47, %v419_v43  ;;  %v2456_v6 = vpop.f32.mrb[20].mxu1  ;;  %v426_v46 = vmul.f32 %v2362_v21, %v2362_v21 }
 0x102   :  { %3534 = vst [vmem:[#allocation6_spill] sm:$0xff] %v2456_v6  ;;  %v347_v12 = vadd.f32 %v346_v59, %v2334_v1  ;;  %v458_v15 = vadd.f32 %v457_v60, %v420_v56  ;;  %v2461_v18 = vpop.f32.mrb[21].mxu1  ;;  %v427_v59 = vmul.f32 %v2369_v25, %v2369_v25 }
 0x103   :  { %3535 = vst [vmem:[#allocation7_spill] sm:$0xff] %v2461_v18  ;;  %v377_v26 = vadd.f32 %v376_v2, %v2341_v5  ;;  %v488_v27 = vadd.f32 %v487_v3, %v421_v63  ;;  %v2466_v30 = vpop.f32.mrb[22].mxu1  ;;  %v428_v2 = vmul.f32 %v2376_v29, %v2376_v29 }
 0x104   :  { %3536 = vst [vmem:[#allocation8_spill] sm:$0xff] %v2466_v30  ;;  %v348_v36 = vadd.f32 %v347_v12, %v2348_v9  ;;  %v459_v37 = vadd.f32 %v458_v15, %v422_v7  ;;  %v2471_v38 = vpop.f32.mrb[23].mxu1  ;;  %v429_v12 = vmul.f32 %v2383_v34, %v2383_v34 }
 0x105   :  { %3537 = vst [vmem:[#allocation9_spill] sm:$0xff] %v2471_v38  ;;  %v378_v42 = vadd.f32 %v377_v26, %v2355_v14  ;;  %v489_v43 = vadd.f32 %v488_v27, %v423_v19  ;;  %v430_v27 = vmul.f32 %v2390_v41, %v2390_v41 }
 0x106   :  { %v460_v47 = vadd.f32 %v459_v37, %v424_v35  ;;  %v349_v56 = vadd.f32 %v348_v36, %v2362_v21 }
 0x107   :  { %v490_v60 = vadd.f32 %v489_v43, %v425_v39  ;;  %v379_v63 = vadd.f32 %v378_v42, %v2369_v25  ;;  %v431_v39 = vmul.f32 %v2397_v45, %v2397_v45 }
 0x108   :  { %v350_v3 = vadd.f32 %v349_v56, %v2376_v29  ;;  %v461_v7 = vadd.f32 %v460_v47, %v426_v46  ;;  %v432_v47 = vmul.f32 %v2404_v55, %v2404_v55 }
 0x109   :  { %v380_v15 = vadd.f32 %v379_v63, %v2383_v34  ;;  %v491_v19 = vadd.f32 %v490_v60, %v427_v59  ;;  %v2488_v26 = vpop.f32.mrb[24].mxu1  ;;  %v433_v63 = vmul.f32 %v2411_v62, %v2411_v62 }
 0x10a   :  { %3538 = vst [vmem:[#allocation10_spill] sm:$0xff] %v2488_v26  ;;  %v351_v35 = vadd.f32 %v350_v3, %v2390_v41  ;;  %v462_v36 = vadd.f32 %v461_v7, %v428_v2  ;;  %v2493_v37 = vpop.f32.mrb[25].mxu1  ;;  %v436_v41 = vmul.f32 %v2432_v23, %v2432_v23 }
 0x10b   :  { %3539 = vst [vmem:[#allocation11_spill] sm:$0xff] %v2493_v37  ;;  %v381_v42 = vadd.f32 %v380_v15, %v2397_v45  ;;  %v492_v43 = vadd.f32 %v491_v19, %v429_v12  ;;  %v2498_v46 = vpop.f32.mrb[26].mxu1  ;;  %v434_v12 = vmul.f32 %v2418_v11, %v2418_v11 }
 0x10c   :  { %3540 = vst [vmem:[#allocation12_spill] sm:$0xff] %v2498_v46  ;;  %v352_v56 = vadd.f32 %v351_v35, %v2404_v55  ;;  %v463_v59 = vadd.f32 %v462_v36, %v430_v27  ;;  %v2503_v60 = vpop.f32.mrb[27].mxu1  ;;  %v435_v35 = vmul.f32 %v2425_v17, %v2425_v17 }
 0x10d   :  { %3541 = vst [vmem:[#allocation13_spill] sm:$0xff] %v2503_v60  ;;  %v382_v2 = vadd.f32 %v381_v42, %v2411_v62  ;;  %v493_v3 = vadd.f32 %v492_v43, %v431_v39  ;;  %v437_v43 = vmul.f32 %v2439_v32, %v2439_v32 }
 0x10e   :  { %v353_v7 = vadd.f32 %v352_v56, %v2418_v11  ;;  %v464_v15 = vadd.f32 %v463_v59, %v432_v47 }
 0x10f   :  { %v383_v19 = vadd.f32 %v382_v2, %v2425_v17  ;;  %v494_v27 = vadd.f32 %v493_v3, %v433_v63  ;;  %v438_v63 = vmul.f32 %v2456_v6, %v2456_v6 }
 0x110   :  { %v465_v36 = vadd.f32 %v464_v15, %v434_v12  ;;  %v354_v55 = vadd.f32 %v353_v7, %v2432_v23  ;;  %v439_v12 = vmul.f32 %v2461_v18, %v2461_v18 }
 0x111   :  { %v495_v42 = vadd.f32 %v494_v27, %v435_v35  ;;  %v384_v39 = vadd.f32 %v383_v19, %v2439_v32  ;;  %v2520_v56 = vpop.f32.mrb[28].mxu1 }
 0x112   :  { %3542 = vst [vmem:[#allocation14_spill] sm:$0xff] %v2520_v56  ;;  %v466_v47 = vadd.f32 %v465_v36, %v436_v41  ;;  %v355_v59 = vadd.f32 %v354_v55, %v2456_v6  ;;  %v2525_v2 = vpop.f32.mrb[29].mxu1  ;;  %v440_v41 = vmul.f32 %v2466_v30, %v2466_v30  ;;  %v441_v6 = vmul.f32 %v2471_v38, %v2471_v38 }
 0x113   :  { %v496_v3 = vadd.f32 %v495_v42, %v437_v43  ;;  %v385_v7 = vadd.f32 %v384_v39, %v2461_v18  ;;  %v331_v15 = vpop.f32.mrb[30].mxu1  ;;  %v442_v43 = vmul.f32 %v2488_v26, %v2488_v26 }
 0x114   :  { %v467_v19 = vadd.f32 %v466_v47, %v438_v63  ;;  %v356_v35 = vadd.f32 %v355_v59, %v2466_v30  ;;  %v332_v27 = vpop.f32.mrb[31].mxu1  ;;  %v443_v59 = vmul.f32 %v2493_v37, %v2493_v37 }
 0x115   :  { %v497_v55 = vadd.f32 %v496_v3, %v439_v12  ;;  %v386_v36 = vadd.f32 %v385_v7, %v2471_v38  ;;  %v444_v7 = vmul.f32 %v2498_v46, %v2498_v46  ;;  %v446_v12 = vmul.f32 %v2520_v56, %v2520_v56 }
 0x116   :  { %v468_v42 = vadd.f32 %v467_v19, %v440_v41  ;;  %v357_v39 = vadd.f32 %v356_v35, %v2488_v26  ;;  %v447_v41 = vmul.f32 %v2525_v2, %v2525_v2 }
 0x117   :  { %v498_v15 = vadd.f32 %v497_v55, %v441_v6  ;;  %v387_v47 = vadd.f32 %v386_v36, %v2493_v37  ;;  %v445_v6 = vmul.f32 %v2503_v60, %v2503_v60 }
 0x118   :  { %v469_v63 = vadd.f32 %v468_v42, %v442_v43  ;;  %v358_v3 = vadd.f32 %v357_v39, %v2498_v46 }
 0x119   :  { %v499_v19 = vadd.f32 %v498_v15, %v443_v59  ;;  %v388_v35 = vadd.f32 %v387_v47, %v2503_v60 }
 0x11a   :  { %v470_v27 = vadd.f32 %v469_v63, %v444_v7  ;;  %v359_v55 = vadd.f32 %v358_v3, %v2520_v56 }
 0x11b   :  { %v500_v36 = vadd.f32 %v499_v19, %v445_v6  ;;  %v389_v42 = vadd.f32 %v388_v35, %v2525_v2 }
 0x11c   :  { %v360_v39 = vrot.slane %v359_v55, 4  ;;  %v471_v43 = vadd.f32 %v470_v27, %v446_v12 }
 0x11d   :  { %v390_v46 = vrot.slane %v389_v42, 4  ;;  %v501_v26 = vadd.f32 %v500_v36, %v447_v41 }
 0x11e   :  { %v361_v37 = vadd.f32 %v360_v39, %v359_v55  ;;  %v472_v15 = vrot.slane %v471_v43, 4 }
 0x11f   :  { %v391_v59 = vadd.f32 %v390_v46, %v389_v42  ;;  %v502_v47 = vrot.slane %v501_v26, 4 }
 0x120   :  { %v362_v30 = vrot.slane %v361_v37, 2  ;;  %v473_v38 = vadd.f32 %v472_v15, %v471_v43 }
 0x121   :  { %v392_v60 = vrot.slane %v391_v59, 2  ;;  %v503_v18 = vadd.f32 %v502_v47, %v501_v26 }
 0x122   :  { %v363_v23 = vadd.f32 %v362_v30, %v361_v37  ;;  %v474_v11 = vrot.slane %v473_v38, 2 }
 0x123   :  { %v393_v63 = vadd.f32 %v392_v60, %v391_v59  ;;  %v504_v7 = vrot.slane %v503_v18, 2 }
 0x124   :  { %v364_v3 = vrot.slane %v363_v23, 1  ;;  %v475_v19 = vadd.f32 %v474_v11, %v473_v38  ;;  %v526_v38 = vlaneseq }
 0x125   :  { %v394_v6 = vrot.slane %v393_v63, 1  ;;  %v505_v35 = vadd.f32 %v504_v7, %v503_v18 }
 0x126   :  { %v365_v56 = vadd.f32 %v364_v3, %v363_v23  ;;  %v476_v12 = vrot.slane %v475_v19, 1  ;;  %v2099_v23 = vmov 1966171168  }
 0x127   :  { %v395_v27 = vadd.f32 %v394_v6, %v393_v63  ;;  %v506_v41 = vrot.slane %v505_v35, 1  ;;  %v524_v18 = vunpack.c.l.s4 %v2099_v23 }
 0x128   :  { %v396_v55 = vmul.f32 0.005, %v365_v56  ;;  %v477_v36 = vadd.f32 %v476_v12, %v475_v19  ;;  %v527_v56 = vshrl.u32 %v526_v38, 7  ;;  %v334_v12 = vld [vmem:[%s3494_s2] sm:$0x3] }
 0x129   :  { %v397_v46 = vmul.f32 0.005, %v395_v27  ;;  %v507_v42 = vadd.f32 %v506_v41, %v505_v35  ;;  %v525_v63 = vunpack.c.0.s8 %v524_v18 }
 0x12a   :  { %v508_v39 = vmul.f32 0.005, %v477_v36  ;;  %v510_v43 = vmul.f32 %v396_v55, %v396_v55  ;;  %v2561_v41 = vsub.s32 0, %v527_v56  ;;  %v2563_v36 = vsub.s32 1, %v527_v56 }
 0x12b   :  { %v509_v15 = vmul.f32 0.005, %v507_v42  ;;  %v511_v26 = vmul.f32 %v397_v46, %v397_v46  ;;  %v2554_v3 = vsub.s32 %v525_v63, %v527_v56 }
 0x12c   :  { %v512_v30 = vsub.f32 %v508_v39, %v510_v43 }
 0x12d   :  { %v513_v37 = vsub.f32 %v509_v15, %v511_v26 }
 0x12e   :  { %v514_v60 = vmax.f32 %v512_v30, 0.0 }
 0x12f   :  { %v515_v59 = vmax.f32 %v513_v37, 0.0 }
 0x130   :  { %v516_v47 = vadd.f32 1e-05, %v514_v60 }
 0x131   :  { %v517_v11 = vadd.f32 1e-05, %v515_v59 }
 0x132   :  { %2090 = vrsqrt.f32 %v516_v47 }
 0x133   :  { %2092 = vrsqrt.f32 %v517_v11 }
 0x13c   :  { %v2091_v7 = vpop.eup %2090 }
 0x13d   :  { %v2093_v19 = vpop.eup %2092 }
 0x13e   :  { %v522_v6 = vcombine.low %v2091_v7, %v2093_v19  ;;  %v3545_v19 = vld [vmem:[#allocation4_spill] sm:$0xff] }
 0x140   :  { %v529_v35 = vrot.slane %v522_v6, %v2554_v3 }
 0x142   :  { %v536_v27 = vrot.slane %v529_v35, %v2554_v3 }
 0x144   :  { %v538_v42 = vmul.f32 %v536_v27, %v334_v12 }
 0x146   :  { %v2566_v39 = vrot.slane %v538_v42, %v2561_v41  ;;  %v2569_v43 = vrot.slane %v538_v42, %v2563_v36 }
 0x148   :  { %v550_v15 = vmul.f32 %v2566_v39, %v396_v55  ;;  %v551_v26 = vmul.f32 %v2569_v43, %v397_v46  ;;  %v2575_v30 = vmul.f32 %v2569_v43, %v2525_v2  ;;  %v572_v37 = vmul.f32 %v2569_v43, %v2308_v50 }
 0x149   :  { %v574_v60 = vmul.f32 %v2569_v43, %v2322_v57  ;;  %v571_v59 = vmul.f32 %v2566_v39, %v2304_v48  ;;  %v573_v47 = vmul.f32 %v2566_v39, %v2312_v52  ;;  %v576_v55 = vmul.f32 %v2569_v43, %v2339_v4 }
 0x14a   :  { %v554_v46 = vcombine.low %v550_v15, %v551_v26  ;;  %v578_v2 = vmul.f32 %v2569_v43, %v2353_v13  ;;  %v575_v11 = vmul.f32 %v2566_v39, %v2332_v0  ;;  %v577_v50 = vmul.f32 %v2566_v39, %v2346_v8 }
 0x14b   :  { %v580_v57 = vmul.f32 %v2569_v43, %v2367_v24  ;;  %v582_v48 = vmul.f32 %v2569_v43, %v2381_v33  ;;  %v579_v52 = vmul.f32 %v2566_v39, %v2360_v20  ;;  %v581_v4 = vmul.f32 %v2566_v39, %v2374_v28  ;;  %v335_v33 = vld [vmem:[%s3495_s3] sm:$0x3] }
 0x14c   :  { %v561_v13 = vrot.slane %v554_v46, %v2554_v3  ;;  %v584_v0 = vmul.f32 %v2569_v43, %v2395_v44  ;;  %v586_v8 = vmul.f32 %v2569_v43, %v2409_v61  ;;  %v583_v24 = vmul.f32 %v2566_v39, %v2388_v40 }
 0x14d   :  { %v585_v20 = vmul.f32 %v2566_v39, %v2402_v54  ;;  %v2615_v28 = vmul.f32 %v2569_v43, %v2423_v16  ;;  %v2619_v44 = vmul.f32 %v2569_v43, %v2437_v31  ;;  %v2623_v61 = vmul.f32 %v2566_v39, %v2416_v10 }
 0x14e   :  { %v568_v40 = vrot.slane %v561_v13, %v2554_v3  ;;  %v2628_v23 = vmul.f32 %v2566_v39, %v2430_v22  ;;  %v2632_v54 = vmul.f32 %v2569_v43, %v2310_v51  ;;  %v2636_v16 = vmul.f32 %v2569_v43, %v2324_v58 }
 0x14f   :  { %v2640_v31 = vmul.f32 %v2566_v39, %v2306_v49  ;;  %v2644_v10 = vmul.f32 %v2566_v39, %v2314_v53  ;;  %v2648_v22 = vmul.f32 %v2569_v43, %v2341_v5  ;;  %v2652_v51 = vmul.f32 %v2569_v43, %v2355_v14 }
 0x150   :  { %v570_v18 = vsub.f32 %v335_v33, %v568_v40  ;;  %v2656_v58 = vmul.f32 %v2566_v39, %v2334_v1  ;;  %v2660_v49 = vmul.f32 %v2566_v39, %v2348_v9  ;;  %v2664_v53 = vmul.f32 %v2569_v43, %v2369_v25 }
 0x151   :  { %v2668_v5 = vmul.f32 %v2569_v43, %v2383_v34  ;;  %v2672_v14 = vmul.f32 %v2566_v39, %v2362_v21  ;;  %v2676_v1 = vmul.f32 %v2566_v39, %v2376_v29  ;;  %v2680_v9 = vmul.f32 %v2569_v43, %v2397_v45  ;;  %v3543_v21 = vld [vmem:[#allocation2_spill] sm:$0xff]  ;;  %v3544_v29 = vld [vmem:[#allocation3_spill] sm:$0xff] }
 0x152   :  { %v2683_v38 = vrot.slane %v570_v18, %v2561_v41  ;;  %v2686_v25 = vrot.slane %v570_v18, %v2563_v36  ;;  %v2690_v34 = vmul.f32 %v2569_v43, %v2411_v62  ;;  %v2694_v63 = vmul.f32 %v2566_v39, %v3543_v21 }
 0x153   :  { %v2698_v56 = vmul.f32 %v2566_v39, %v3544_v29  ;;  %v2702_v45 = vmul.f32 %v2569_v43, %v2425_v17  ;;  %v2706_v7 = vmul.f32 %v2569_v43, %v2439_v32  ;;  %v2710_v62 = vmul.f32 %v2566_v39, %v3545_v19 }
 0x154   :  { %v633_v6 = vadd.f32 %v2686_v25, %v572_v37  ;;  %v635_v35 = vadd.f32 %v2686_v25, %v574_v60  ;;  %v632_v12 = vadd.f32 %v2683_v38, %v571_v59  ;;  %v634_v27 = vadd.f32 %v2683_v38, %v573_v47 }
 0x155   :  { %v637_v42 = vadd.f32 %v2686_v25, %v576_v55  ;;  %v639_v17 = vadd.f32 %v2686_v25, %v578_v2  ;;  %v636_v15 = vadd.f32 %v2683_v38, %v575_v11  ;;  %v638_v32 = vadd.f32 %v2683_v38, %v577_v50 }
 0x156   :  { %v683_v26 = vmax.f32 %v633_v6, 0.0  ;;  %v685_v46 = vmax.f32 %v635_v35, 0.0  ;;  %v682_v13 = vmax.f32 %v632_v12, 0.0  ;;  %v684_v33 = vmax.f32 %v634_v27, 0.0 }
 0x157   :  { %v687_v40 = vmax.f32 %v637_v42, 0.0  ;;  %v689_v37 = vmax.f32 %v639_v17, 0.0  ;;  %v686_v18 = vmax.f32 %v636_v15, 0.0  ;;  %v688_v60 = vmax.f32 %v638_v32, 0.0 }
 0x158   :  { %v733_v21 = vpack.c.bf16 %v685_v46, %v683_v26  ;;  %v732_v59 = vpack.c.bf16 %v684_v33, %v682_v13  ;;  %v641_v47 = vadd.f32 %v2686_v25, %v580_v57  ;;  %v643_v55 = vadd.f32 %v2686_v25, %v582_v48 }
 0x159   :  { %v735_v29 = vpack.c.bf16 %v689_v37, %v687_v40  ;;  %v734_v2 = vpack.c.bf16 %v688_v60, %v686_v18  ;;  %v640_v11 = vadd.f32 %v2683_v38, %v579_v52  ;;  %v642_v50 = vadd.f32 %v2683_v38, %v581_v4 }
 0x15a   :  { %982 = vmatprep.mubr.bf16.mxu1 %v733_v21  ;;  %v691_v19 = vmax.f32 %v641_v47, 0.0  ;;  %v693_v6 = vmax.f32 %v643_v55, 0.0  ;;  %v645_v35 = vadd.f32 %v2686_v25, %v584_v0  ;;  %v647_v12 = vadd.f32 %v2686_v25, %v586_v8 }
 0x15b   :  { %983 = vmatmul.mubr.bf16.vlgmr.msra.gmra.mrb[32].mxu1 %v732_v59  ;;  %v690_v27 = vmax.f32 %v640_v11, 0.0  ;;  %v692_v42 = vmax.f32 %v642_v50, 0.0  ;;  %v644_v57 = vadd.f32 %v2683_v38, %v583_v24  ;;  %v646_v48 = vadd.f32 %v2683_v38, %v585_v20 }
 0x15c   :  { %992 = vmatprep.mubr.bf16.mxu1 %v735_v29  ;;  %v737_v17 = vpack.c.bf16 %v693_v6, %v691_v19  ;;  %v695_v15 = vmax.f32 %v645_v35, 0.0  ;;  %v697_v52 = vmax.f32 %v647_v12, 0.0  ;;  %v649_v4 = vadd.f32 %v2686_v25, %v2615_v28 }
 0x15d   :  { %v736_v32 = vpack.c.bf16 %v692_v42, %v690_v27  ;;  %v694_v26 = vmax.f32 %v644_v57, 0.0  ;;  %v696_v46 = vmax.f32 %v646_v48, 0.0  ;;  %v651_v0 = vadd.f32 %v2686_v25, %v2619_v44 }
 0x15e   :  { %v739_v8 = vpack.c.bf16 %v697_v52, %v695_v15  ;;  %v699_v13 = vmax.f32 %v649_v4, 0.0  ;;  %v648_v24 = vadd.f32 %v2683_v38, %v2623_v61  ;;  %v650_v20 = vadd.f32 %v2683_v38, %v2628_v23 }
 0x15f   :  { %v2736_v33 = vpack.c.bf16 %v696_v46, %v694_v26  ;;  %v701_v40 = vmax.f32 %v651_v0, 0.0  ;;  %v653_v28 = vadd.f32 %v2686_v25, %v2632_v54  ;;  %v655_v37 = vadd.f32 %v2686_v25, %v2636_v16 }
 0x160   :  { %v698_v18 = vmax.f32 %v648_v24, 0.0  ;;  %v700_v60 = vmax.f32 %v650_v20, 0.0  ;;  %v652_v44 = vadd.f32 %v2683_v38, %v2640_v31  ;;  %v654_v61 = vadd.f32 %v2683_v38, %v2644_v10  ;;  %v3546_v24 = vld [vmem:[#allocation5_spill] sm:$0xff] }
 0x161   :  { %v2746_v21 = vpack.c.bf16 %v701_v40, %v699_v13  ;;  %v703_v23 = vmax.f32 %v653_v28, 0.0  ;;  %v705_v59 = vmax.f32 %v655_v37, 0.0  ;;  %v657_v47 = vadd.f32 %v2686_v25, %v2648_v22  ;;  %v3547_v28 = vld [vmem:[#allocation7_spill] sm:$0xff] }
 0x162   :  { %v2750_v55 = vpack.c.bf16 %v700_v60, %v698_v18  ;;  %v702_v54 = vmax.f32 %v652_v44, 0.0  ;;  %v704_v29 = vmax.f32 %v654_v61, 0.0  ;;  %v659_v16 = vadd.f32 %v2686_v25, %v2652_v51  ;;  %v3548_v60 = vld [vmem:[#allocation9_spill] sm:$0xff] }
 0x163   :  { %993 = vmatmul.mubr.bf16.gmra.mrb[36].mxu1 %v734_v2  ;;  %v2754_v11 = vpack.c.bf16 %v705_v59, %v703_v23  ;;  %v707_v31 = vmax.f32 %v657_v47, 0.0  ;;  %v656_v10 = vadd.f32 %v2683_v38, %v2656_v58  ;;  %v658_v50 = vadd.f32 %v2683_v38, %v2660_v49  ;;  %v3549_v59 = vld [vmem:[#allocation6_spill] sm:$0xff] }
 0x164   :  { %1002 = vmatprep.mubr.bf16.mxu1 %v737_v17  ;;  %v2760_v19 = vpack.c.bf16 %v704_v29, %v702_v54  ;;  %v709_v22 = vmax.f32 %v659_v16, 0.0  ;;  %v661_v6 = vadd.f32 %v2686_v25, %v2664_v53  ;;  %v663_v51 = vadd.f32 %v2686_v25, %v2668_v5 }
 0x165   :  { %v706_v2 = vmax.f32 %v656_v10, 0.0  ;;  %v708_v35 = vmax.f32 %v658_v50, 0.0  ;;  %v660_v12 = vadd.f32 %v2683_v38, %v2672_v14  ;;  %v662_v58 = vadd.f32 %v2683_v38, %v2676_v1 }
 0x166   :  { %v2770_v27 = vpack.c.bf16 %v709_v22, %v707_v31  ;;  %v711_v49 = vmax.f32 %v661_v6, 0.0  ;;  %v713_v42 = vmax.f32 %v663_v51, 0.0  ;;  %v665_v57 = vadd.f32 %v2686_v25, %v2680_v9  ;;  %v3552_v31 = vld [vmem:[#allocation13_spill] sm:$0xff]  ;;  %v3553_v51 = vld [vmem:[#allocation10_spill] sm:$0xff] }
 0x167   :  { %v2774_v48 = vpack.c.bf16 %v708_v35, %v706_v2  ;;  %v710_v53 = vmax.f32 %v660_v12, 0.0  ;;  %v712_v17 = vmax.f32 %v662_v58, 0.0  ;;  %v667_v5 = vadd.f32 %v2686_v25, %v2690_v34 }
 0x168   :  { %v747_v15 = vpack.c.bf16 %v713_v42, %v711_v49  ;;  %v715_v52 = vmax.f32 %v665_v57, 0.0  ;;  %v664_v14 = vadd.f32 %v2683_v38, %v2694_v63  ;;  %v666_v1 = vadd.f32 %v2683_v38, %v2698_v56 }
 0x169   :  { %v746_v4 = vpack.c.bf16 %v712_v17, %v710_v53  ;;  %v717_v26 = vmax.f32 %v667_v5, 0.0  ;;  %v669_v9 = vadd.f32 %v2686_v25, %v2702_v45  ;;  %v671_v46 = vadd.f32 %v2686_v25, %v2706_v7  ;;  %v3554_v53 = vld [vmem:[#allocation12_spill] sm:$0xff] }
 0x16a   :  { %v714_v0 = vmax.f32 %v664_v14, 0.0  ;;  %v716_v13 = vmax.f32 %v666_v1, 0.0  ;;  %v609_v34 = vmul.f32 %v2566_v39, %v3546_v24  ;;  %v668_v20 = vadd.f32 %v2683_v38, %v2710_v62 }
 0x16b   :  { %1003 = vmatmul.mubr.bf16.gmra.mrb[40].mxu1 %v736_v32  ;;  %v749_v63 = vpack.c.bf16 %v717_v26, %v715_v52  ;;  %v719_v40 = vmax.f32 %v669_v9, 0.0  ;;  %v721_v56 = vmax.f32 %v671_v46, 0.0  ;;  %v612_v37 = vmul.f32 %v2569_v43, %v3547_v28  ;;  %v3550_v32 = vld [vmem:[#allocation8_spill] sm:$0xff] }
 0x16c   :  { %1012 = vmatprep.mubr.bf16.mxu1 %v739_v8  ;;  %v748_v45 = vpack.c.bf16 %v716_v13, %v714_v0  ;;  %v670_v18 = vadd.f32 %v2683_v38, %v609_v34  ;;  %v718_v7 = vmax.f32 %v668_v20, 0.0  ;;  %v614_v44 = vmul.f32 %v2569_v43, %v3548_v60  ;;  %v3551_v8 = vld [vmem:[#allocation11_spill] sm:$0xff]  ;;  %v3555_v0 = vld [vmem:[#allocation14_spill] sm:$0xff] }
 0x16d   :  { %v751_v61 = vpack.c.bf16 %v721_v56, %v719_v40  ;;  %v673_v23 = vadd.f32 %v2686_v25, %v612_v37  ;;  %v611_v62 = vmul.f32 %v2566_v39, %v3549_v59  ;;  %v613_v47 = vmul.f32 %v2566_v39, %v3550_v32 }
 0x16e   :  { %v720_v54 = vmax.f32 %v670_v18, 0.0  ;;  %v675_v29 = vadd.f32 %v2686_v25, %v614_v44  ;;  %v616_v16 = vmul.f32 %v2569_v43, %v3551_v8  ;;  %v618_v10 = vmul.f32 %v2569_v43, %v3552_v31 }
 0x16f   :  { %v723_v50 = vmax.f32 %v673_v23, 0.0  ;;  %v672_v22 = vadd.f32 %v2683_v38, %v611_v62  ;;  %v674_v6 = vadd.f32 %v2683_v38, %v613_v47  ;;  %v615_v2 = vmul.f32 %v2566_v39, %v3553_v51 }
 0x170   :  { %v750_v35 = vpack.c.bf16 %v720_v54, %v718_v7  ;;  %v725_v12 = vmax.f32 %v675_v29, 0.0  ;;  %v677_v58 = vadd.f32 %v2686_v25, %v616_v16  ;;  %v679_v49 = vadd.f32 %v2686_v25, %v618_v10 }
 0x171   :  { %v722_v42 = vmax.f32 %v672_v22, 0.0  ;;  %v724_v57 = vmax.f32 %v674_v6, 0.0  ;;  %v617_v17 = vmul.f32 %v2566_v39, %v3554_v53  ;;  %v676_v43 = vadd.f32 %v2683_v38, %v615_v2 }
 0x172   :  { %v753_v5 = vpack.c.bf16 %v725_v12, %v723_v50  ;;  %v727_v52 = vmax.f32 %v677_v58, 0.0  ;;  %v729_v14 = vmax.f32 %v679_v49, 0.0  ;;  %v681_v1 = vadd.f32 %v2686_v25, %v2575_v30 }
 0x173   :  { %1013 = vmatmul.mubr.bf16.gmra.mrb[44].mxu1 %v2736_v33  ;;  %v752_v26 = vpack.c.bf16 %v724_v57, %v722_v42  ;;  %v678_v9 = vadd.f32 %v2683_v38, %v617_v17  ;;  %v726_v46 = vmax.f32 %v676_v43, 0.0  ;;  %v619_v13 = vmul.f32 %v2566_v39, %v3555_v0  ;;  %v2074_v0 = vld [vmem:[%s3496_s7 + $0x40] sm:$0xff]  }
 0x174   :  { %1022 = vmatprep.mubr.bf16.mxu1 %v2746_v21  ;;  %v755_v24 = vpack.c.bf16 %v729_v14, %v727_v52  ;;  %v731_v39 = vmax.f32 %v681_v1, 0.0  ;;  %1912 = vmatprep.subr.bf16.mxu0 %v2074_v0 }
 0x175   :  { %v728_v34 = vmax.f32 %v678_v9, 0.0  ;;  %v680_v20 = vadd.f32 %v2683_v38, %v619_v13 }
 0x176   :  { %v757_v30 = vpack.c.bf16 %v731_v39, %v731_v39 }
 0x177   :  { %v754_v40 = vpack.c.bf16 %v728_v34, %v726_v46  ;;  %v730_v38 = vmax.f32 %v680_v20, 0.0 }
 0x179   :  { %v756_v25 = vpack.c.bf16 %v730_v38, %v730_v38 }
 0x17b   :  { %1023 = vmatmul.mubr.bf16.gmra.mrb[48].mxu1 %v2750_v55 }
 0x17c   :  { %1032 = vmatprep.mubr.bf16.mxu1 %v2754_v11 }
 0x183   :  { %1033 = vmatmul.mubr.bf16.gmra.mrb[52].mxu1 %v2760_v19 }
 0x184   :  { %1042 = vmatprep.mubr.bf16.mxu1 %v2770_v27 }
 0x18b   :  { %1043 = vmatmul.mubr.bf16.gmra.mrb[56].mxu1 %v2774_v48 }
 0x18c   :  { %1052 = vmatprep.mubr.bf16.mxu1 %v747_v15 }
 0x193   :  { %1053 = vmatmul.mubr.bf16.gmra.mrb[60].mxu1 %v746_v4 }
 0x194   :  { %1062 = vmatprep.mubr.bf16.mxu1 %v749_v63 }
 0x19b   :  { %1063 = vmatmul.mubr.bf16.gmra.mrb[64].mxu1 %v748_v45 }
 0x19c   :  { %1072 = vmatprep.mubr.bf16.mxu1 %v751_v61 }
 0x1a3   :  { %1073 = vmatmul.mubr.bf16.gmra.mrb[68].mxu1 %v750_v35 }
 0x1a4   :  { %1082 = vmatprep.mubr.bf16.mxu1 %v753_v5 }
 0x1ab   :  { %1083 = vmatmul.mubr.bf16.gmra.mrb[72].mxu1 %v752_v26 }
 0x1ac   :  { %1092 = vmatprep.mubr.bf16.mxu1 %v755_v24 }
 0x1b3   :  { %1093 = vmatmul.mubr.bf16.gmra.mrb[76].mxu1 %v754_v40  ;;  %v2075_v40 = vld [vmem:[%s3496_s7] sm:$0xff]  }
 0x1b4   :  { %1102 = vmatprep.mubr.bf16.mxu1 %v757_v30  ;;  %1913 = vmatpush3.bf16.msra.mxu0 %v2075_v40 }
 0x1bb   :  { %1103 = vmatmul.mubr.bf16.gmra.mrb[80].mxu1 %v756_v25  ;;  %v2076_v25 = vld [vmem:[%s3496_s7 + $0x48] sm:$0xff]  }
 0x1bc   :  { %1914 = vmatprep.subr.bf16.mxu0 %v2076_v25 }
 0x22e   :  { %v2827_v33 = vpop.f32.mrb[32].mxu1 }
 0x22f   :  { %v2829_v21 = vpop.f32.mrb[33].mxu1  ;;  %v1175_v11 = vmul.f32 %v2827_v33, %v2827_v33 }
 0x230   :  { %v2831_v55 = vpop.f32.mrb[34].mxu1  ;;  %v1176_v15 = vmul.f32 %v2829_v21, %v2829_v21 }
 0x231   :  { %v1113_v19 = vadd.f32 %v2831_v55, %v2827_v33  ;;  %v1177_v27 = vmul.f32 %v2831_v55, %v2831_v55  ;;  %v2839_v48 = vpop.f32.mrb[35].mxu1 }
 0x232   :  { %v1143_v4 = vadd.f32 %v2839_v48, %v2829_v21  ;;  %v1178_v63 = vmul.f32 %v2839_v48, %v2839_v48 }
 0x233   :  { %v1225_v56 = vadd.f32 %v1177_v27, %v1175_v11 }
 0x234   :  { %v1255_v28 = vadd.f32 %v1178_v63, %v1176_v15  ;;  %v2078_v15 = vld [vmem:[%s3496_s7 + $0x50] sm:$0xff]  }
 0x236   :  { %v2847_v37 = vpop.f32.mrb[36].mxu1 }
 0x237   :  { %v1114_v45 = vadd.f32 %v1113_v19, %v2847_v37  ;;  %v1179_v18 = vmul.f32 %v2847_v37, %v2847_v37  ;;  %v2852_v7 = vpop.f32.mrb[37].mxu1  ;;  %v2077_v19 = vld [vmem:[%s3496_s7 + $0x8] sm:$0xff]  }
 0x238   :  { %v1144_v60 = vadd.f32 %v1143_v4, %v2852_v7  ;;  %v1180_v44 = vmul.f32 %v2852_v7, %v2852_v7  ;;  %v2857_v61 = vpop.f32.mrb[38].mxu1  ;;  %1915 = vmatpush3.bf16.msra.mxu0 %v2077_v19 }
 0x239   :  { %v1226_v23 = vadd.f32 %v1225_v56, %v1179_v18  ;;  %v1115_v59 = vadd.f32 %v1114_v45, %v2857_v61  ;;  %v1181_v62 = vmul.f32 %v2857_v61, %v2857_v61  ;;  %v2862_v32 = vpop.f32.mrb[39].mxu1  ;;  %v2079_v45 = vld [vmem:[%s3496_s7 + $0x10] sm:$0xff]   ;;  %1916 = vmatprep.subr.bf16.mxu0 %v2078_v15 }
 0x23a   :  { %v1256_v47 = vadd.f32 %v1255_v28, %v1180_v44  ;;  %v1145_v54 = vadd.f32 %v1144_v60, %v2862_v32  ;;  %v1182_v29 = vmul.f32 %v2862_v32, %v2862_v32  ;;  %v2087_v15 = vld [vmem:[%s3496_s7 + $0x30] sm:$0xff]  }
 0x23b   :  { %v1227_v8 = vadd.f32 %v1226_v23, %v1181_v62  ;;  %v2080_v23 = vld [vmem:[%s3496_s7 + $0x58] sm:$0xff]  }
 0x23c   :  { %v1257_v16 = vadd.f32 %v1256_v47, %v1182_v29  ;;  %1917 = vmatpush3.bf16.msra.mxu0 %v2079_v45 }
 0x23d   :  { %1918 = vmatprep.subr.bf16.mxu0 %v2080_v23 }
 0x23e   :  { %v2867_v31 = vpop.f32.mrb[40].mxu1 }
 0x23f   :  { %v1116_v10 = vadd.f32 %v1115_v59, %v2867_v31  ;;  %v1183_v50 = vmul.f32 %v2867_v31, %v2867_v31  ;;  %v2872_v22 = vpop.f32.mrb[41].mxu1 }
 0x240   :  { %v1146_v6 = vadd.f32 %v1145_v54, %v2872_v22  ;;  %v1184_v51 = vmul.f32 %v2872_v22, %v2872_v22  ;;  %v2877_v2 = vpop.f32.mrb[42].mxu1 }
 0x241   :  { %v1228_v35 = vadd.f32 %v1227_v8, %v1183_v50  ;;  %v1117_v12 = vadd.f32 %v1116_v10, %v2877_v2  ;;  %v1185_v58 = vmul.f32 %v2877_v2, %v2877_v2  ;;  %v2882_v49 = vpop.f32.mrb[43].mxu1  ;;  %v2081_v50 = vld [vmem:[%s3496_s7 + $0x18] sm:$0xff]  }
 0x242   :  { %v1258_v42 = vadd.f32 %v1257_v16, %v1184_v51  ;;  %v1147_v57 = vadd.f32 %v1146_v6, %v2882_v49  ;;  %v1186_v53 = vmul.f32 %v2882_v49, %v2882_v49  ;;  %v2082_v51 = vld [vmem:[%s3496_s7 + $0x60] sm:$0xff]   ;;  %1919 = vmatpush3.bf16.msra.mxu0 %v2081_v50 }
 0x243   :  { %v1229_v17 = vadd.f32 %v1228_v35, %v1185_v58  ;;  %1920 = vmatprep.subr.bf16.mxu0 %v2082_v51 }
 0x244   :  { %v1259_v43 = vadd.f32 %v1258_v42, %v1186_v53 }
 0x246   :  { %v2887_v5 = vpop.f32.mrb[44].mxu1 }
 0x247   :  { %v1118_v52 = vadd.f32 %v1117_v12, %v2887_v5  ;;  %v1187_v14 = vmul.f32 %v2887_v5, %v2887_v5  ;;  %v2892_v1 = vpop.f32.mrb[45].mxu1 }
 0x248   :  { %v1148_v26 = vadd.f32 %v1147_v57, %v2892_v1  ;;  %v1188_v9 = vmul.f32 %v2892_v1, %v2892_v1  ;;  %v2897_v46 = vpop.f32.mrb[46].mxu1  ;;  %v2083_v57 = vld [vmem:[%s3496_s7 + $0x20] sm:$0xff]  }
 0x249   :  { %v1230_v13 = vadd.f32 %v1229_v17, %v1187_v14  ;;  %v1119_v24 = vadd.f32 %v1118_v52, %v2897_v46  ;;  %v1189_v34 = vmul.f32 %v2897_v46, %v2897_v46  ;;  %v2905_v20 = vpop.f32.mrb[47].mxu1  ;;  %v2084_v52 = vld [vmem:[%s3496_s7 + $0x68] sm:$0xff]   ;;  %1921 = vmatpush3.bf16.msra.mxu0 %v2083_v57 }
 0x24a   :  { %v1260_v39 = vadd.f32 %v1259_v43, %v1188_v9  ;;  %v1149_v30 = vadd.f32 %v1148_v26, %v2905_v20  ;;  %v1190_v38 = vmul.f32 %v2905_v20, %v2905_v20  ;;  %1922 = vmatprep.subr.bf16.mxu0 %v2084_v52 }
 0x24b   :  { %v1231_v11 = vadd.f32 %v1230_v13, %v1189_v34 }
 0x24c   :  { %v1261_v27 = vadd.f32 %v1260_v39, %v1190_v38  ;;  %v2085_v39 = vld [vmem:[%s3496_s7 + $0x28] sm:$0xff]   ;;  %v2086_v38 = vld [vmem:[%s3496_s7 + $0x70] sm:$0xff]  }
 0x24d   :  { %1923 = vmatpush3.bf16.msra.mxu0 %v2085_v39 }
 0x24e   :  { %v2922_v4 = vpop.f32.mrb[48].mxu1  ;;  %1924 = vmatprep.subr.bf16.mxu0 %v2086_v38 }
 0x24f   :  { %v1120_v63 = vadd.f32 %v1119_v24, %v2922_v4  ;;  %v1191_v56 = vmul.f32 %v2922_v4, %v2922_v4  ;;  %v2927_v28 = vpop.f32.mrb[49].mxu1 }
 0x250   :  { %v1150_v18 = vadd.f32 %v1149_v30, %v2927_v28  ;;  %v1192_v60 = vmul.f32 %v2927_v28, %v2927_v28  ;;  %v2935_v44 = vpop.f32.mrb[50].mxu1 }
 0x251   :  { %v1232_v59 = vadd.f32 %v1231_v11, %v1191_v56  ;;  %v1121_v62 = vadd.f32 %v1120_v63, %v2935_v44  ;;  %v1193_v47 = vmul.f32 %v2935_v44, %v2935_v44  ;;  %v2943_v54 = vpop.f32.mrb[51].mxu1  ;;  %1925 = vmatpush3.bf16.msra.mxu0 %v2087_v15 }
 0x252   :  { %v1262_v29 = vadd.f32 %v1261_v27, %v1192_v60  ;;  %v1151_v8 = vadd.f32 %v1150_v18, %v2943_v54  ;;  %v1194_v16 = vmul.f32 %v2943_v54, %v2943_v54  ;;  %v2088_v18 = vld [vmem:[%s3496_s7 + $0x78] sm:$0xff]  }
 0x253   :  { %v1233_v10 = vadd.f32 %v1232_v59, %v1193_v47  ;;  %1926 = vmatprep.subr.bf16.mxu0 %v2088_v18 }
 0x254   :  { %v1263_v6 = vadd.f32 %v1262_v29, %v1194_v16 }
 0x256   :  { %v2954_v35 = vpop.f32.mrb[52].mxu1 }
 0x257   :  { %v1122_v12 = vadd.f32 %v1121_v62, %v2954_v35  ;;  %v1195_v58 = vmul.f32 %v2954_v35, %v2954_v35  ;;  %v2959_v42 = vpop.f32.mrb[53].mxu1 }
 0x258   :  { %v1152_v53 = vadd.f32 %v1151_v8, %v2959_v42  ;;  %v1196_v17 = vmul.f32 %v2959_v42, %v2959_v42  ;;  %v2967_v43 = vpop.f32.mrb[54].mxu1 }
 0x259   :  { %v1234_v14 = vadd.f32 %v1233_v10, %v1195_v58  ;;  %v1123_v26 = vadd.f32 %v1122_v12, %v2967_v43  ;;  %v1197_v9 = vmul.f32 %v2967_v43, %v2967_v43  ;;  %v2975_v0 = vpop.f32.mrb[55].mxu1  ;;  %v2089_v10 = vld [vmem:[%s3496_s7 + $0x38] sm:$0xff]  }
 0x25a   :  { %v1264_v13 = vadd.f32 %v1263_v6, %v1196_v17  ;;  %v1153_v24 = vadd.f32 %v1152_v53, %v2975_v0  ;;  %v1198_v34 = vmul.f32 %v2975_v0, %v2975_v0  ;;  %1927 = vmatpush3.bf16.msra.mxu0 %v2089_v10 }
 0x25b   :  { %v1235_v40 = vadd.f32 %v1234_v14, %v1197_v9 }
 0x25c   :  { %v1265_v30 = vadd.f32 %v1264_v13, %v1198_v34 }
 0x25e   :  { %v2986_v25 = vpop.f32.mrb[56].mxu1 }
 0x25f   :  { %v1124_v11 = vadd.f32 %v1123_v26, %v2986_v25  ;;  %v1199_v19 = vmul.f32 %v2986_v25, %v2986_v25  ;;  %v2991_v27 = vpop.f32.mrb[57].mxu1 }
 0x260   :  { %v1154_v63 = vadd.f32 %v1153_v24, %v2991_v27  ;;  %v1200_v56 = vmul.f32 %v2991_v27, %v2991_v27  ;;  %v2999_v45 = vpop.f32.mrb[58].mxu1 }
 0x261   :  { %v1236_v60 = vadd.f32 %v1235_v40, %v1199_v19  ;;  %v1125_v23 = vadd.f32 %v1124_v11, %v2999_v45  ;;  %v1201_v59 = vmul.f32 %v2999_v45, %v2999_v45  ;;  %v3007_v62 = vpop.f32.mrb[59].mxu1 }
 0x262   :  { %v1266_v47 = vadd.f32 %v1265_v30, %v1200_v56  ;;  %v1155_v29 = vadd.f32 %v1154_v63, %v3007_v62  ;;  %v1202_v8 = vmul.f32 %v3007_v62, %v3007_v62 }
 0x263   :  { %v1237_v16 = vadd.f32 %v1236_v60, %v1201_v59 }
 0x264   :  { %v1267_v50 = vadd.f32 %v1266_v47, %v1202_v8 }
 0x266   :  { %v3015_v6 = vpop.f32.mrb[60].mxu1 }
 0x267   :  { %v1126_v51 = vadd.f32 %v1125_v23, %v3015_v6  ;;  %v1203_v12 = vmul.f32 %v3015_v6, %v3015_v6  ;;  %v3020_v58 = vpop.f32.mrb[61].mxu1 }
 0x268   :  { %v1156_v57 = vadd.f32 %v1155_v29, %v3020_v58  ;;  %v1204_v53 = vmul.f32 %v3020_v58, %v3020_v58  ;;  %v3025_v17 = vpop.f32.mrb[62].mxu1 }
 0x269   :  { %v1238_v52 = vadd.f32 %v1237_v16, %v1203_v12  ;;  %v1127_v14 = vadd.f32 %v1126_v51, %v3025_v17  ;;  %v1205_v26 = vmul.f32 %v3025_v17, %v3025_v17  ;;  %v3030_v9 = vpop.f32.mrb[63].mxu1 }
 0x26a   :  { %v1268_v13 = vadd.f32 %v1267_v50, %v1204_v53  ;;  %v1157_v24 = vadd.f32 %v1156_v57, %v3030_v9  ;;  %v1206_v34 = vmul.f32 %v3030_v9, %v3030_v9 }
 0x26b   :  { %v1239_v40 = vadd.f32 %v1238_v52, %v1205_v26 }
 0x26c   :  { %v1269_v39 = vadd.f32 %v1268_v13, %v1206_v34 }
 0x26e   :  { %v3035_v30 = vpop.f32.mrb[64].mxu1 }
 0x26f   :  { %3556 = vst [vmem:[#allocation2_spill] sm:$0xff] %v3035_v30  ;;  %v1128_v38 = vadd.f32 %v1127_v14, %v3035_v30  ;;  %v1207_v11 = vmul.f32 %v3035_v30, %v3035_v30  ;;  %v3040_v19 = vpop.f32.mrb[65].mxu1 }
 0x270   :  { %v1158_v15 = vadd.f32 %v1157_v24, %v3040_v19  ;;  %v1208_v63 = vmul.f32 %v3040_v19, %v3040_v19  ;;  %v3045_v56 = vpop.f32.mrb[66].mxu1 }
 0x271   :  { %3557 = vst [vmem:[#allocation3_spill] sm:$0xff] %v3045_v56  ;;  %v1240_v18 = vadd.f32 %v1239_v40, %v1207_v11  ;;  %v1129_v60 = vadd.f32 %v1128_v38, %v3045_v56  ;;  %v1209_v23 = vmul.f32 %v3045_v56, %v3045_v56  ;;  %v3050_v59 = vpop.f32.mrb[67].mxu1 }
 0x272   :  { %3558 = vst [vmem:[#allocation4_spill] sm:$0xff] %v3050_v59  ;;  %v1270_v47 = vadd.f32 %v1269_v39, %v1208_v63  ;;  %v1159_v29 = vadd.f32 %v1158_v15, %v3050_v59  ;;  %v1210_v8 = vmul.f32 %v3050_v59, %v3050_v59 }
 0x273   :  { %v1241_v16 = vadd.f32 %v1240_v18, %v1209_v23 }
 0x274   :  { %v1271_v10 = vadd.f32 %v1270_v47, %v1210_v8 }
 0x276   :  { %v3055_v50 = vpop.f32.mrb[68].mxu1 }
 0x277   :  { %3559 = vst [vmem:[#allocation5_spill] sm:$0xff] %v3055_v50  ;;  %v1130_v51 = vadd.f32 %v1129_v60, %v3055_v50  ;;  %v1211_v12 = vmul.f32 %v3055_v50, %v3055_v50  ;;  %v3060_v57 = vpop.f32.mrb[69].mxu1 }
 0x278   :  { %3560 = vst [vmem:[#allocation7_spill] sm:$0xff] %v3060_v57  ;;  %v1160_v53 = vadd.f32 %v1159_v29, %v3060_v57  ;;  %v1212_v52 = vmul.f32 %v3060_v57, %v3060_v57  ;;  %v3065_v14 = vpop.f32.mrb[70].mxu1 }
 0x279   :  { %3561 = vst [vmem:[#allocation9_spill] sm:$0xff] %v3065_v14  ;;  %v1242_v26 = vadd.f32 %v1241_v16, %v1211_v12  ;;  %v1131_v13 = vadd.f32 %v1130_v51, %v3065_v14  ;;  %v1213_v24 = vmul.f32 %v3065_v14, %v3065_v14  ;;  %v3070_v34 = vpop.f32.mrb[71].mxu1 }
 0x27a   :  { %3562 = vst [vmem:[#allocation6_spill] sm:$0xff] %v3070_v34  ;;  %v1272_v40 = vadd.f32 %v1271_v10, %v1212_v52  ;;  %v1161_v39 = vadd.f32 %v1160_v53, %v3070_v34  ;;  %v1214_v38 = vmul.f32 %v3070_v34, %v3070_v34 }
 0x27b   :  { %v1243_v11 = vadd.f32 %v1242_v26, %v1213_v24 }
 0x27c   :  { %v1273_v15 = vadd.f32 %v1272_v40, %v1214_v38 }
 0x27e   :  { %v3075_v63 = vpop.f32.mrb[72].mxu1 }
 0x27f   :  { %3563 = vst [vmem:[#allocation8_spill] sm:$0xff] %v3075_v63  ;;  %v1132_v18 = vadd.f32 %v1131_v13, %v3075_v63  ;;  %v1215_v60 = vmul.f32 %v3075_v63, %v3075_v63  ;;  %v3080_v23 = vpop.f32.mrb[73].mxu1 }
 0x280   :  { %3564 = vst [vmem:[#allocation11_spill] sm:$0xff] %v3080_v23  ;;  %v1162_v47 = vadd.f32 %v1161_v39, %v3080_v23  ;;  %v1216_v29 = vmul.f32 %v3080_v23, %v3080_v23  ;;  %v3085_v8 = vpop.f32.mrb[74].mxu1 }
 0x281   :  { %3565 = vst [vmem:[#allocation13_spill] sm:$0xff] %v3085_v8  ;;  %v1244_v16 = vadd.f32 %v1243_v11, %v1215_v60  ;;  %v1133_v10 = vadd.f32 %v1132_v18, %v3085_v8  ;;  %v1217_v51 = vmul.f32 %v3085_v8, %v3085_v8  ;;  %v3090_v12 = vpop.f32.mrb[75].mxu1 }
 0x282   :  { %3566 = vst [vmem:[#allocation10_spill] sm:$0xff] %v3090_v12  ;;  %v1274_v53 = vadd.f32 %v1273_v15, %v1216_v29  ;;  %v1163_v52 = vadd.f32 %v1162_v47, %v3090_v12  ;;  %v1218_v26 = vmul.f32 %v3090_v12, %v3090_v12 }
 0x283   :  { %v1245_v13 = vadd.f32 %v1244_v16, %v1217_v51 }
 0x284   :  { %v1275_v24 = vadd.f32 %v1274_v53, %v1218_v26 }
 0x286   :  { %v3095_v40 = vpop.f32.mrb[76].mxu1 }
 0x287   :  { %3567 = vst [vmem:[#allocation12_spill] sm:$0xff] %v3095_v40  ;;  %v1134_v39 = vadd.f32 %v1133_v10, %v3095_v40  ;;  %v1219_v38 = vmul.f32 %v3095_v40, %v3095_v40  ;;  %v3100_v11 = vpop.f32.mrb[77].mxu1 }
 0x288   :  { %3568 = vst [vmem:[#allocation14_spill] sm:$0xff] %v3100_v11  ;;  %v1164_v18 = vadd.f32 %v1163_v52, %v3100_v11  ;;  %v1220_v15 = vmul.f32 %v3100_v11, %v3100_v11  ;;  %v3105_v60 = vpop.f32.mrb[78].mxu1 }
 0x289   :  { %3569 = vst [vmem:[#allocation15_spill] sm:$0xff] %v3105_v60  ;;  %v1246_v47 = vadd.f32 %v1245_v13, %v1219_v38  ;;  %v1135_v29 = vadd.f32 %v1134_v39, %v3105_v60  ;;  %v1221_v16 = vmul.f32 %v3105_v60, %v3105_v60  ;;  %v3110_v51 = vpop.f32.mrb[79].mxu1 }
 0x28a   :  { %3570 = vst [vmem:[#allocation16_spill] sm:$0xff] %v3110_v51  ;;  %v1276_v10 = vadd.f32 %v1275_v24, %v1220_v15  ;;  %v1165_v53 = vadd.f32 %v1164_v18, %v3110_v51  ;;  %v1222_v26 = vmul.f32 %v3110_v51, %v3110_v51 }
 0x28b   :  { %v1247_v52 = vadd.f32 %v1246_v47, %v1221_v16 }
 0x28c   :  { %v1277_v40 = vadd.f32 %v1276_v10, %v1222_v26 }
 0x28e   :  { %v3115_v8 = vpop.f32.mrb[80].mxu1 }
 0x28f   :  { %3571 = vst [vmem:[#allocation17_spill] sm:$0xff] %v3115_v8  ;;  %v1136_v11 = vadd.f32 %v1135_v29, %v3115_v8  ;;  %v1223_v13 = vmul.f32 %v3115_v8, %v3115_v8  ;;  %v1106_v39 = vpop.f32.mrb[81].mxu1 }
 0x290   :  { %v1166_v38 = vadd.f32 %v1165_v53, %v1106_v39  ;;  %v1224_v60 = vmul.f32 %v1106_v39, %v1106_v39  ;;  %v1108_v63 = vpop.f32.mrb[82].mxu1 }
 0x291   :  { %v1137_v12 = vrot.slane %v1136_v11, 4  ;;  %v1248_v24 = vadd.f32 %v1247_v52, %v1223_v13  ;;  %v1109_v15 = vpop.f32.mrb[83].mxu1 }
 0x292   :  { %v1167_v18 = vrot.slane %v1166_v38, 4  ;;  %v1278_v23 = vadd.f32 %v1277_v40, %v1224_v60 }
 0x293   :  { %v1138_v14 = vadd.f32 %v1137_v12, %v1136_v11  ;;  %v1249_v51 = vrot.slane %v1248_v24, 4 }
 0x294   :  { %v1168_v47 = vadd.f32 %v1167_v18, %v1166_v38  ;;  %v1279_v16 = vrot.slane %v1278_v23, 4 }
 0x295   :  { %v1139_v10 = vrot.slane %v1138_v14, 2  ;;  %v1250_v26 = vadd.f32 %v1249_v51, %v1248_v24 }
 0x296   :  { %v1169_v50 = vrot.slane %v1168_v47, 2  ;;  %v1280_v29 = vadd.f32 %v1279_v16, %v1278_v23 }
 0x297   :  { %v1140_v34 = vadd.f32 %v1139_v10, %v1138_v14  ;;  %v1251_v57 = vrot.slane %v1250_v26, 2 }
 0x298   :  { %v1170_v8 = vadd.f32 %v1169_v50, %v1168_v47  ;;  %v1281_v56 = vrot.slane %v1280_v29, 2 }
 0x299   :  { %v1141_v53 = vrot.slane %v1140_v34, 1  ;;  %v1252_v30 = vadd.f32 %v1251_v57, %v1250_v26 }
 0x29a   :  { %v1171_v63 = vrot.slane %v1170_v8, 1  ;;  %v1282_v59 = vadd.f32 %v1281_v56, %v1280_v29 }
 0x29b   :  { %v1142_v52 = vadd.f32 %v1141_v53, %v1140_v34  ;;  %v1253_v13 = vrot.slane %v1252_v30, 1 }
 0x29c   :  { %v1172_v15 = vadd.f32 %v1171_v63, %v1170_v8  ;;  %v1283_v40 = vrot.slane %v1282_v59, 1 }
 0x29d   :  { %v1173_v12 = vmul.f32 0.005, %v1142_v52  ;;  %v1254_v11 = vadd.f32 %v1253_v13, %v1252_v30  ;;  %v1111_v30 = vld [vmem:[%s3497_s5] sm:$0x3] }
 0x29e   :  { %v1174_v60 = vmul.f32 0.005, %v1172_v15  ;;  %v1284_v38 = vadd.f32 %v1283_v40, %v1282_v59 }
 0x29f   :  { %v1285_v18 = vmul.f32 0.005, %v1254_v11  ;;  %v1287_v51 = vmul.f32 %v1173_v12, %v1173_v12 }
 0x2a0   :  { %v1286_v24 = vmul.f32 0.005, %v1284_v38  ;;  %v1288_v23 = vmul.f32 %v1174_v60, %v1174_v60 }
 0x2a1   :  { %v1289_v14 = vsub.f32 %v1285_v18, %v1287_v51 }
 0x2a2   :  { %v1290_v16 = vsub.f32 %v1286_v24, %v1288_v23 }
 0x2a3   :  { %v1291_v50 = vmax.f32 %v1289_v14, 0.0 }
 0x2a4   :  { %v1292_v47 = vmax.f32 %v1290_v16, 0.0 }
 0x2a5   :  { %v1293_v10 = vadd.f32 1e-05, %v1291_v50 }
 0x2a6   :  { %v1294_v57 = vadd.f32 1e-05, %v1292_v47 }
 0x2a7   :  { %2094 = vrsqrt.f32 %v1293_v10  ;;  %v3577_v10 = vld [vmem:[#allocation5_spill] sm:$0xff] }
 0x2a8   :  { %2096 = vrsqrt.f32 %v1294_v57 }
 0x2b1   :  { %v2095_v56 = vpop.eup %2094 }
 0x2b2   :  { %v2097_v34 = vpop.eup %2096 }
 0x2b3   :  { %v1299_v8 = vcombine.low %v2095_v56, %v2097_v34 }
 0x2b5   :  { %v1306_v26 = vrot.slane %v1299_v8, %v2554_v3 }
 0x2b7   :  { %v1313_v59 = vrot.slane %v1306_v26, %v2554_v3 }
 0x2b9   :  { %v1315_v29 = vmul.f32 %v1313_v59, %v1111_v30 }
 0x2bb   :  { %v3126_v53 = vrot.slane %v1315_v29, %v2561_v41  ;;  %v3129_v63 = vrot.slane %v1315_v29, %v2563_v36 }
 0x2bd   :  { %v1327_v52 = vmul.f32 %v3126_v53, %v1173_v12  ;;  %v1328_v13 = vmul.f32 %v3129_v63, %v1174_v60  ;;  %v3134_v15 = vmul.f32 %v3129_v63, %v1106_v39  ;;  %v1349_v40 = vmul.f32 %v3129_v63, %v2829_v21 }
 0x2be   :  { %v1351_v11 = vmul.f32 %v3129_v63, %v2839_v48  ;;  %v1348_v38 = vmul.f32 %v3126_v53, %v2827_v33  ;;  %v1350_v18 = vmul.f32 %v3126_v53, %v2831_v55  ;;  %v1353_v12 = vmul.f32 %v3129_v63, %v2852_v7 }
 0x2bf   :  { %v1331_v51 = vcombine.low %v1327_v52, %v1328_v13  ;;  %v1355_v39 = vmul.f32 %v3129_v63, %v2862_v32  ;;  %v1352_v60 = vmul.f32 %v3126_v53, %v2847_v37  ;;  %v1354_v21 = vmul.f32 %v3126_v53, %v2857_v61 }
 0x2c0   :  { %v1357_v48 = vmul.f32 %v3129_v63, %v2872_v22  ;;  %v1359_v33 = vmul.f32 %v3129_v63, %v2882_v49  ;;  %v1356_v55 = vmul.f32 %v3126_v53, %v2867_v31  ;;  %v1358_v7 = vmul.f32 %v3126_v53, %v2877_v2  ;;  %v1112_v49 = vld [vmem:[%s3498_s6] sm:$0x3] }
 0x2c1   :  { %v1338_v32 = vrot.slane %v1331_v51, %v2554_v3  ;;  %v1361_v37 = vmul.f32 %v3129_v63, %v2892_v1  ;;  %v1363_v61 = vmul.f32 %v3129_v63, %v2905_v20  ;;  %v1360_v22 = vmul.f32 %v3126_v53, %v2887_v5 }
 0x2c2   :  { %v1362_v31 = vmul.f32 %v3126_v53, %v2897_v46  ;;  %v3174_v2 = vmul.f32 %v3129_v63, %v2927_v28  ;;  %v3178_v1 = vmul.f32 %v3129_v63, %v2943_v54  ;;  %v3182_v20 = vmul.f32 %v3126_v53, %v2922_v4 }
 0x2c3   :  { %v1345_v5 = vrot.slane %v1338_v32, %v2554_v3  ;;  %v3187_v24 = vmul.f32 %v3126_v53, %v2935_v44  ;;  %v3191_v46 = vmul.f32 %v3129_v63, %v2959_v42  ;;  %v3195_v28 = vmul.f32 %v3129_v63, %v2975_v0 }
 0x2c4   :  { %v3199_v54 = vmul.f32 %v3126_v53, %v2954_v35  ;;  %v3203_v4 = vmul.f32 %v3126_v53, %v2967_v43  ;;  %v3207_v3 = vmul.f32 %v3129_v63, %v2991_v27  ;;  %v3211_v44 = vmul.f32 %v3129_v63, %v3007_v62 }
 0x2c5   :  { %v1347_v42 = vsub.f32 %v1112_v49, %v1345_v5  ;;  %v3215_v0 = vmul.f32 %v3126_v53, %v2986_v25  ;;  %v3219_v35 = vmul.f32 %v3126_v53, %v2999_v45  ;;  %v3223_v43 = vmul.f32 %v3129_v63, %v3020_v58 }
 0x2c6   :  { %v3227_v27 = vmul.f32 %v3129_v63, %v3030_v9  ;;  %v3231_v62 = vmul.f32 %v3126_v53, %v3015_v6  ;;  %v3235_v25 = vmul.f32 %v3126_v53, %v3025_v17  ;;  %v3239_v45 = vmul.f32 %v3129_v63, %v3040_v19  ;;  %v3572_v9 = vld [vmem:[#allocation4_spill] sm:$0xff]  ;;  %v3573_v6 = vld [vmem:[#allocation2_spill] sm:$0xff]  ;;  %v3574_v17 = vld [vmem:[#allocation3_spill] sm:$0xff] }
 0x2c7   :  { %v3242_v23 = vrot.slane %v1347_v42, %v2561_v41  ;;  %v3245_v58 = vrot.slane %v1347_v42, %v2563_v36  ;;  %v3249_v14 = vmul.f32 %v3129_v63, %v3572_v9  ;;  %v3253_v16 = vmul.f32 %v3126_v53, %v3573_v6  ;;  %v3575_v19 = vld [vmem:[#allocation7_spill] sm:$0xff]  ;;  %v3576_v41 = vld [vmem:[#allocation6_spill] sm:$0xff] }
 0x2c8   :  { %v3257_v50 = vmul.f32 %v3126_v53, %v3574_v17  ;;  %v3261_v47 = vmul.f32 %v3129_v63, %v3575_v19  ;;  %v3265_v36 = vmul.f32 %v3129_v63, %v3576_v41  ;;  %v3269_v57 = vmul.f32 %v3126_v53, %v3577_v10 }
 0x2c9   :  { %v1410_v56 = vadd.f32 %v3245_v58, %v1349_v40  ;;  %v1412_v34 = vadd.f32 %v3245_v58, %v1351_v11  ;;  %v1409_v8 = vadd.f32 %v3242_v23, %v1348_v38  ;;  %v1411_v26 = vadd.f32 %v3242_v23, %v1350_v18 }
 0x2ca   :  { %v1414_v30 = vadd.f32 %v3245_v58, %v1353_v12  ;;  %v1416_v59 = vadd.f32 %v3245_v58, %v1355_v39  ;;  %v1413_v29 = vadd.f32 %v3242_v23, %v1352_v60  ;;  %v1415_v52 = vadd.f32 %v3242_v23, %v1354_v21 }
 0x2cb   :  { %v1460_v13 = vmax.f32 %v1410_v56, 0.0  ;;  %v1462_v51 = vmax.f32 %v1412_v34, 0.0  ;;  %v1459_v32 = vmax.f32 %v1409_v8, 0.0  ;;  %v1461_v49 = vmax.f32 %v1411_v26, 0.0 }
 0x2cc   :  { %v1464_v5 = vmax.f32 %v1414_v30, 0.0  ;;  %v1466_v40 = vmax.f32 %v1416_v59, 0.0  ;;  %v1463_v42 = vmax.f32 %v1413_v29, 0.0  ;;  %v1465_v11 = vmax.f32 %v1415_v52, 0.0 }
 0x2cd   :  { %v1510_v9 = vpack.c.bf16 %v1462_v51, %v1460_v13  ;;  %v1509_v38 = vpack.c.bf16 %v1461_v49, %v1459_v32  ;;  %v1418_v18 = vadd.f32 %v3245_v58, %v1357_v48  ;;  %v1420_v12 = vadd.f32 %v3245_v58, %v1359_v33 }
 0x2ce   :  { %v1512_v6 = vpack.c.bf16 %v1466_v40, %v1464_v5  ;;  %v1511_v39 = vpack.c.bf16 %v1465_v11, %v1463_v42  ;;  %v1417_v60 = vadd.f32 %v3242_v23, %v1356_v55  ;;  %v1419_v21 = vadd.f32 %v3242_v23, %v1358_v7 }
 0x2cf   :  { %1702 = vmatprep.mubr.bf16.mxu0 %v1510_v9  ;;  %v1468_v17 = vmax.f32 %v1418_v18, 0.0  ;;  %v1470_v19 = vmax.f32 %v1420_v12, 0.0  ;;  %v1422_v41 = vadd.f32 %v3245_v58, %v1361_v37  ;;  %v1424_v10 = vadd.f32 %v3245_v58, %v1363_v61 }
 0x2d0   :  { %1703 = vmatmul.mubr.bf16.vlgmr.msra.gmra.mrb[20].mxu0 %v1509_v38  ;;  %v1467_v56 = vmax.f32 %v1417_v60, 0.0  ;;  %v1469_v34 = vmax.f32 %v1419_v21, 0.0  ;;  %v1421_v48 = vadd.f32 %v3242_v23, %v1360_v22  ;;  %v1423_v33 = vadd.f32 %v3242_v23, %v1362_v31 }
 0x2d1   :  { %1710 = vmatprep.mubr.bf16.mxu0 %v1512_v6  ;;  %v1514_v8 = vpack.c.bf16 %v1470_v19, %v1468_v17  ;;  %v1472_v26 = vmax.f32 %v1422_v41, 0.0  ;;  %v1474_v55 = vmax.f32 %v1424_v10, 0.0  ;;  %v1426_v7 = vadd.f32 %v3245_v58, %v3174_v2 }
 0x2d2   :  { %v1513_v30 = vpack.c.bf16 %v1469_v34, %v1467_v56  ;;  %v1471_v59 = vmax.f32 %v1421_v48, 0.0  ;;  %v1473_v29 = vmax.f32 %v1423_v33, 0.0  ;;  %v1428_v37 = vadd.f32 %v3245_v58, %v3178_v1 }
 0x2d3   :  { %v1516_v61 = vpack.c.bf16 %v1474_v55, %v1472_v26  ;;  %v1476_v52 = vmax.f32 %v1426_v7, 0.0  ;;  %v1425_v22 = vadd.f32 %v3242_v23, %v3182_v20  ;;  %v1427_v31 = vadd.f32 %v3242_v23, %v3187_v24 }
 0x2d4   :  { %v3295_v13 = vpack.c.bf16 %v1473_v29, %v1471_v59  ;;  %v1478_v51 = vmax.f32 %v1428_v37, 0.0  ;;  %v1430_v2 = vadd.f32 %v3245_v58, %v3191_v46  ;;  %v1432_v32 = vadd.f32 %v3245_v58, %v3195_v28  ;;  %v3578_v29 = vld [vmem:[#allocation9_spill] sm:$0xff] }
 0x2d5   :  { %v1475_v49 = vmax.f32 %v1425_v22, 0.0  ;;  %v1477_v5 = vmax.f32 %v1427_v31, 0.0  ;;  %v1429_v1 = vadd.f32 %v3242_v23, %v3199_v54  ;;  %v1431_v20 = vadd.f32 %v3242_v23, %v3203_v4  ;;  %v3579_v22 = vld [vmem:[#allocation11_spill] sm:$0xff] }
 0x2d6   :  { %v3305_v40 = vpack.c.bf16 %v1478_v51, %v1476_v52  ;;  %v1480_v24 = vmax.f32 %v1430_v2, 0.0  ;;  %v1482_v42 = vmax.f32 %v1432_v32, 0.0  ;;  %v1434_v11 = vadd.f32 %v3245_v58, %v3207_v3  ;;  %v3580_v2 = vld [vmem:[#allocation10_spill] sm:$0xff] }
 0x2d7   :  { %v3309_v9 = vpack.c.bf16 %v1477_v5, %v1475_v49  ;;  %v1479_v46 = vmax.f32 %v1429_v1, 0.0  ;;  %v1481_v38 = vmax.f32 %v1431_v20, 0.0  ;;  %v1436_v28 = vadd.f32 %v3245_v58, %v3211_v44  ;;  %v3581_v1 = vld [vmem:[#allocation8_spill] sm:$0xff] }
 0x2d8   :  { %1711 = vmatmul.mubr.bf16.gmra.mrb[24].mxu0 %v1511_v39  ;;  %v3313_v18 = vpack.c.bf16 %v1482_v42, %v1480_v24  ;;  %v1484_v54 = vmax.f32 %v1434_v11, 0.0  ;;  %v1433_v4 = vadd.f32 %v3242_v23, %v3215_v0  ;;  %v1435_v12 = vadd.f32 %v3242_v23, %v3219_v35 }
 0x2d9   :  { %1718 = vmatprep.mubr.bf16.mxu0 %v1514_v8  ;;  %v3319_v6 = vpack.c.bf16 %v1481_v38, %v1479_v46  ;;  %v1486_v3 = vmax.f32 %v1436_v28, 0.0  ;;  %v1438_v60 = vadd.f32 %v3245_v58, %v3223_v43  ;;  %v1440_v44 = vadd.f32 %v3245_v58, %v3227_v27  ;;  %v3584_v46 = vld [vmem:[#allocation16_spill] sm:$0xff] }
 0x2da   :  { %v1483_v39 = vmax.f32 %v1433_v4, 0.0  ;;  %v1485_v21 = vmax.f32 %v1435_v12, 0.0  ;;  %v1437_v17 = vadd.f32 %v3242_v23, %v3231_v62  ;;  %v1439_v0 = vadd.f32 %v3242_v23, %v3235_v25  ;;  %v3585_v12 = vld [vmem:[#allocation12_spill] sm:$0xff] }
 0x2db   :  { %v3329_v19 = vpack.c.bf16 %v1486_v3, %v1484_v54  ;;  %v1488_v35 = vmax.f32 %v1438_v60, 0.0  ;;  %v1490_v41 = vmax.f32 %v1440_v44, 0.0  ;;  %v1442_v10 = vadd.f32 %v3245_v58, %v3239_v45 }
 0x2dc   :  { %v3333_v56 = vpack.c.bf16 %v1485_v21, %v1483_v39  ;;  %v1487_v43 = vmax.f32 %v1437_v17, 0.0  ;;  %v1489_v34 = vmax.f32 %v1439_v0, 0.0  ;;  %v1444_v27 = vadd.f32 %v3245_v58, %v3249_v14 }
 0x2dd   :  { %v1524_v48 = vpack.c.bf16 %v1490_v41, %v1488_v35  ;;  %v1492_v33 = vmax.f32 %v1442_v10, 0.0  ;;  %v1441_v62 = vadd.f32 %v3242_v23, %v3253_v16  ;;  %v1443_v25 = vadd.f32 %v3242_v23, %v3257_v50  ;;  %v3586_v35 = vld [vmem:[#allocation15_spill] sm:$0xff] }
 0x2de   :  { %v1523_v8 = vpack.c.bf16 %v1489_v34, %v1487_v43  ;;  %v1494_v26 = vmax.f32 %v1444_v27, 0.0  ;;  %v1446_v45 = vadd.f32 %v3245_v58, %v3261_v47  ;;  %v1448_v55 = vadd.f32 %v3245_v58, %v3265_v36 }
 0x2df   :  { %v1491_v7 = vmax.f32 %v1441_v62, 0.0  ;;  %v1493_v59 = vmax.f32 %v1443_v25, 0.0  ;;  %v1386_v14 = vmul.f32 %v3126_v53, %v3578_v29  ;;  %v1445_v37 = vadd.f32 %v3242_v23, %v3269_v57 }
 0x2e0   :  { %1719 = vmatmul.mubr.bf16.gmra.mrb[28].mxu0 %v1513_v30  ;;  %v1526_v16 = vpack.c.bf16 %v1494_v26, %v1492_v33  ;;  %v1496_v52 = vmax.f32 %v1446_v45, 0.0  ;;  %v1498_v50 = vmax.f32 %v1448_v55, 0.0  ;;  %v1389_v31 = vmul.f32 %v3129_v63, %v3579_v22  ;;  %v3582_v30 = vld [vmem:[#allocation13_spill] sm:$0xff] }
 0x2e1   :  { %1726 = vmatprep.mubr.bf16.mxu0 %v1516_v61  ;;  %v1525_v47 = vpack.c.bf16 %v1493_v59, %v1491_v7  ;;  %v1447_v51 = vadd.f32 %v3242_v23, %v1386_v14  ;;  %v1495_v36 = vmax.f32 %v1445_v37, 0.0  ;;  %v1391_v32 = vmul.f32 %v3129_v63, %v3580_v2  ;;  %v3583_v61 = vld [vmem:[#allocation14_spill] sm:$0xff]  ;;  %v3587_v26 = vld [vmem:[#allocation17_spill] sm:$0xff] }
 0x2e2   :  { %v1528_v49 = vpack.c.bf16 %v1498_v50, %v1496_v52  ;;  %v1450_v5 = vadd.f32 %v3245_v58, %v1389_v31  ;;  %v1388_v57 = vmul.f32 %v3126_v53, %v3581_v1  ;;  %v1390_v20 = vmul.f32 %v3126_v53, %v3582_v30 }
 0x2e3   :  { %v1497_v24 = vmax.f32 %v1447_v51, 0.0  ;;  %v1452_v42 = vadd.f32 %v3245_v58, %v1391_v32  ;;  %v1393_v11 = vmul.f32 %v3129_v63, %v3583_v61  ;;  %v1395_v38 = vmul.f32 %v3129_v63, %v3584_v46 }
 0x2e4   :  { %v1500_v28 = vmax.f32 %v1450_v5, 0.0  ;;  %v1449_v54 = vadd.f32 %v3242_v23, %v1388_v57  ;;  %v1451_v4 = vadd.f32 %v3242_v23, %v1390_v20  ;;  %v1392_v3 = vmul.f32 %v3126_v53, %v3585_v12 }
 0x2e5   :  { %v1527_v60 = vpack.c.bf16 %v1497_v24, %v1495_v36  ;;  %v1502_v44 = vmax.f32 %v1452_v42, 0.0  ;;  %v1454_v39 = vadd.f32 %v3245_v58, %v1393_v11  ;;  %v1456_v21 = vadd.f32 %v3245_v58, %v1395_v38 }
 0x2e6   :  { %v1499_v17 = vmax.f32 %v1449_v54, 0.0  ;;  %v1501_v0 = vmax.f32 %v1451_v4, 0.0  ;;  %v1394_v41 = vmul.f32 %v3126_v53, %v3586_v35  ;;  %v1453_v63 = vadd.f32 %v3242_v23, %v1392_v3 }
 0x2e7   :  { %v1530_v10 = vpack.c.bf16 %v1502_v44, %v1500_v28  ;;  %v1504_v43 = vmax.f32 %v1454_v39, 0.0  ;;  %v1506_v34 = vmax.f32 %v1456_v21, 0.0  ;;  %v1458_v27 = vadd.f32 %v3245_v58, %v3134_v15 }
 0x2e8   :  { %1727 = vmatmul.mubr.bf16.gmra.mrb[32].mxu0 %v3295_v13  ;;  %v1529_v33 = vpack.c.bf16 %v1501_v0, %v1499_v17  ;;  %v1455_v62 = vadd.f32 %v3242_v23, %v1394_v41  ;;  %v1503_v25 = vmax.f32 %v1453_v63, 0.0  ;;  %v1396_v45 = vmul.f32 %v3126_v53, %v3587_v26 }
 0x2e9   :  { %1734 = vmatprep.mubr.bf16.mxu0 %v3305_v40  ;;  %v1532_v55 = vpack.c.bf16 %v1506_v34, %v1504_v43  ;;  %v1508_v53 = vmax.f32 %v1458_v27, 0.0  ;;  %v3389_v40 = vld [vmem:[%s3499_s8] ss:$0 sm:$0xff] }
 0x2ea   :  { %v1505_v7 = vmax.f32 %v1455_v62, 0.0  ;;  %v1457_v59 = vadd.f32 %v3242_v23, %v1396_v45 }
 0x2eb   :  { %v1534_v15 = vpack.c.bf16 %v1508_v53, %v1508_v53 }
 0x2ec   :  { %v1531_v29 = vpack.c.bf16 %v1505_v7, %v1503_v25  ;;  %v1507_v23 = vmax.f32 %v1457_v59, 0.0 }
 0x2ee   :  { %v1533_v58 = vpack.c.bf16 %v1507_v23, %v1507_v23 }
 0x2f0   :  { %1735 = vmatmul.mubr.bf16.gmra.mrb[36].mxu0 %v3309_v9 }
 0x2f1   :  { %1742 = vmatprep.mubr.bf16.mxu0 %v3313_v18 }
 0x2f8   :  { %1743 = vmatmul.mubr.bf16.gmra.mrb[40].mxu0 %v3319_v6 }
 0x2f9   :  { %1750 = vmatprep.mubr.bf16.mxu0 %v3329_v19 }
 0x300   :  { %1751 = vmatmul.mubr.bf16.gmra.mrb[44].mxu0 %v3333_v56 }
 0x301   :  { %1758 = vmatprep.mubr.bf16.mxu0 %v1524_v48 }
 0x308   :  { %1759 = vmatmul.mubr.bf16.gmra.mrb[48].mxu0 %v1523_v8 }
 0x309   :  { %1766 = vmatprep.mubr.bf16.mxu0 %v1526_v16 }
 0x310   :  { %1767 = vmatmul.mubr.bf16.gmra.mrb[52].mxu0 %v1525_v47 }
 0x311   :  { %1774 = vmatprep.mubr.bf16.mxu0 %v1528_v49 }
 0x318   :  { %1775 = vmatmul.mubr.bf16.gmra.mrb[56].mxu0 %v1527_v60 }
 0x319   :  { %1782 = vmatprep.mubr.bf16.mxu0 %v1530_v10 }
 0x320   :  { %1783 = vmatmul.mubr.bf16.gmra.mrb[60].mxu0 %v1529_v33 }
 0x321   :  { %1790 = vmatprep.mubr.bf16.mxu0 %v1532_v55 }
 0x328   :  { %1791 = vmatmul.mubr.bf16.gmra.mrb[64].mxu0 %v1531_v29 }
 0x329   :  { %1798 = vmatprep.mubr.bf16.mxu0 %v1534_v15 }
 0x330   :  { %1799 = vmatmul.mubr.bf16.gmra.mrb[68].mxu0 %v1533_v58 }
 0x3a3   :  { %v1928_v13 = vpop.f32.mrb[20].mxu0 }
 0x3a4   :  { %v1929_v9 = vpop.f32.mrb[21].mxu0 }
 0x3a5   :  { %v1930_v18 = vadd.f32 %v1929_v9, %v1928_v13  ;;  %v1931_v6 = vpop.f32.mrb[22].mxu0 }
 0x3a6   :  { %v1932_v19 = vpop.f32.mrb[23].mxu0 }
 0x3a7   :  { %v1705_v56 = vadd.f32 %v1930_v18, %v3389_v40  ;;  %v1933_v48 = vadd.f32 %v1932_v19, %v1931_v6 }
 0x3a9   :  { %1806 = vst [vmem:[%s3500_s9] sm:$0xff] %v1705_v56  ;;  %v1708_v8 = vadd.f32 %v1933_v48, %v3389_v40 }
 0x3ab   :  { %1807 = vst [vmem:[%s3500_s9 + $0x8] sm:$0xff] %v1708_v8  ;;  %v1934_v14 = vpop.f32.mrb[24].mxu0 }
 0x3ac   :  { %v1935_v37 = vpop.f32.mrb[25].mxu0 }
 0x3ad   :  { %v1936_v16 = vadd.f32 %v1935_v37, %v1934_v14  ;;  %v1937_v52 = vpop.f32.mrb[26].mxu0 }
 0x3ae   :  { %v1938_v50 = vpop.f32.mrb[27].mxu0 }
 0x3af   :  { %v1713_v22 = vadd.f32 %v1936_v16, %v3389_v40  ;;  %v1939_v31 = vadd.f32 %v1938_v50, %v1937_v52 }
 0x3b1   :  { %1808 = vst [vmem:[%s3500_s9 + $0x10] sm:$0xff] %v1713_v22  ;;  %v1716_v47 = vadd.f32 %v1939_v31, %v3389_v40 }
 0x3b3   :  { %1809 = vst [vmem:[%s3500_s9 + $0x18] sm:$0xff] %v1716_v47  ;;  %v1940_v51 = vpop.f32.mrb[28].mxu0 }
 0x3b4   :  { %v1941_v36 = vpop.f32.mrb[29].mxu0 }
 0x3b5   :  { %v1942_v2 = vadd.f32 %v1941_v36, %v1940_v51  ;;  %v1943_v32 = vpop.f32.mrb[30].mxu0 }
 0x3b6   :  { %v1944_v49 = vpop.f32.mrb[31].mxu0 }
 0x3b7   :  { %v1721_v5 = vadd.f32 %v1942_v2, %v3389_v40  ;;  %v1945_v1 = vadd.f32 %v1944_v49, %v1943_v32 }
 0x3b9   :  { %1810 = vst [vmem:[%s3500_s9 + $0x20] sm:$0xff] %v1721_v5  ;;  %v1724_v57 = vadd.f32 %v1945_v1, %v3389_v40 }
 0x3bb   :  { %1811 = vst [vmem:[%s3500_s9 + $0x28] sm:$0xff] %v1724_v57  ;;  %v1946_v30 = vpop.f32.mrb[32].mxu0 }
 0x3bc   :  { %v1947_v20 = vpop.f32.mrb[33].mxu0 }
 0x3bd   :  { %v1948_v24 = vadd.f32 %v1947_v20, %v1946_v30  ;;  %v1949_v42 = vpop.f32.mrb[34].mxu0 }
 0x3be   :  { %v1950_v61 = vpop.f32.mrb[35].mxu0 }
 0x3bf   :  { %v1729_v11 = vadd.f32 %v1948_v24, %v3389_v40  ;;  %v1951_v46 = vadd.f32 %v1950_v61, %v1949_v42 }
 0x3c1   :  { %1812 = vst [vmem:[%s3500_s9 + $0x30] sm:$0xff] %v1729_v11  ;;  %v1732_v38 = vadd.f32 %v1951_v46, %v3389_v40 }
 0x3c3   :  { %1813 = vst [vmem:[%s3500_s9 + $0x38] sm:$0xff] %v1732_v38  ;;  %v1952_v28 = vpop.f32.mrb[36].mxu0 }
 0x3c4   :  { %v1953_v54 = vpop.f32.mrb[37].mxu0 }
 0x3c5   :  { %v1954_v4 = vadd.f32 %v1953_v54, %v1952_v28  ;;  %v1955_v12 = vpop.f32.mrb[38].mxu0 }
 0x3c6   :  { %v1956_v3 = vpop.f32.mrb[39].mxu0 }
 0x3c7   :  { %v1737_v60 = vadd.f32 %v1954_v4, %v3389_v40  ;;  %v1957_v44 = vadd.f32 %v1956_v3, %v1955_v12 }
 0x3c9   :  { %1814 = vst [vmem:[%s3500_s9 + $0x40] sm:$0xff] %v1737_v60  ;;  %v1740_v39 = vadd.f32 %v1957_v44, %v3389_v40 }
 0x3cb   :  { %1815 = vst [vmem:[%s3500_s9 + $0x48] sm:$0xff] %v1740_v39  ;;  %v1958_v21 = vpop.f32.mrb[40].mxu0 }
 0x3cc   :  { %v1959_v17 = vpop.f32.mrb[41].mxu0 }
 0x3cd   :  { %v1960_v0 = vadd.f32 %v1959_v17, %v1958_v21  ;;  %v1961_v35 = vpop.f32.mrb[42].mxu0 }
 0x3ce   :  { %v1962_v41 = vpop.f32.mrb[43].mxu0 }
 0x3cf   :  { %v1745_v63 = vadd.f32 %v1960_v0, %v3389_v40  ;;  %v1963_v10 = vadd.f32 %v1962_v41, %v1961_v35 }
 0x3d1   :  { %1816 = vst [vmem:[%s3500_s9 + $0x50] sm:$0xff] %v1745_v63  ;;  %v1748_v43 = vadd.f32 %v1963_v10, %v3389_v40 }
 0x3d3   :  { %1817 = vst [vmem:[%s3500_s9 + $0x58] sm:$0xff] %v1748_v43  ;;  %v1964_v34 = vpop.f32.mrb[44].mxu0 }
 0x3d4   :  { %v1965_v27 = vpop.f32.mrb[45].mxu0 }
 0x3d5   :  { %v1966_v33 = vadd.f32 %v1965_v27, %v1964_v34  ;;  %v1967_v62 = vpop.f32.mrb[46].mxu0 }
 0x3d6   :  { %v1968_v25 = vpop.f32.mrb[47].mxu0 }
 0x3d7   :  { %v1753_v26 = vadd.f32 %v1966_v33, %v3389_v40  ;;  %v1969_v45 = vadd.f32 %v1968_v25, %v1967_v62 }
 0x3d9   :  { %1818 = vst [vmem:[%s3500_s9 + $0x60] sm:$0xff] %v1753_v26  ;;  %v1756_v55 = vadd.f32 %v1969_v45, %v3389_v40 }
 0x3db   :  { %1819 = vst [vmem:[%s3500_s9 + $0x68] sm:$0xff] %v1756_v55  ;;  %v1970_v7 = vpop.f32.mrb[48].mxu0 }
 0x3dc   :  { %v1971_v59 = vpop.f32.mrb[49].mxu0 }
 0x3dd   :  { %v1972_v29 = vadd.f32 %v1971_v59, %v1970_v7  ;;  %v1973_v53 = vpop.f32.mrb[50].mxu0 }
 0x3de   :  { %v1974_v15 = vpop.f32.mrb[51].mxu0 }
 0x3df   :  { %v1761_v23 = vadd.f32 %v1972_v29, %v3389_v40  ;;  %v1975_v58 = vadd.f32 %v1974_v15, %v1973_v53 }
 0x3e1   :  { %1820 = vst [vmem:[%s3500_s9 + $0x70] sm:$0xff] %v1761_v23  ;;  %v1764_v13 = vadd.f32 %v1975_v58, %v3389_v40 }
 0x3e3   :  { %1821 = vst [vmem:[%s3500_s9 + $0x78] sm:$0xff] %v1764_v13  ;;  %v1976_v9 = vpop.f32.mrb[52].mxu0 }
 0x3e4   :  { %v1977_v18 = vpop.f32.mrb[53].mxu0 }
 0x3e5   :  { %v1978_v6 = vadd.f32 %v1977_v18, %v1976_v9  ;;  %v1979_v19 = vpop.f32.mrb[54].mxu0 }
 0x3e6   :  { %v1980_v56 = vpop.f32.mrb[55].mxu0 }
 0x3e7   :  { %v1769_v48 = vadd.f32 %v1978_v6, %v3389_v40  ;;  %v1981_v8 = vadd.f32 %v1980_v56, %v1979_v19 }
 0x3e9   :  { %1822 = vst [vmem:[%s3500_s9 + $0x80] sm:$0xff] %v1769_v48  ;;  %v1772_v14 = vadd.f32 %v1981_v8, %v3389_v40 }
 0x3eb   :  { %1823 = vst [vmem:[%s3500_s9 + $0x88] sm:$0xff] %v1772_v14  ;;  %v1982_v37 = vpop.f32.mrb[56].mxu0 }
 0x3ec   :  { %v1983_v16 = vpop.f32.mrb[57].mxu0 }
 0x3ed   :  { %v1984_v52 = vadd.f32 %v1983_v16, %v1982_v37  ;;  %v1985_v50 = vpop.f32.mrb[58].mxu0 }
 0x3ee   :  { %v1986_v22 = vpop.f32.mrb[59].mxu0 }
 0x3ef   :  { %v1777_v31 = vadd.f32 %v1984_v52, %v3389_v40  ;;  %v1987_v47 = vadd.f32 %v1986_v22, %v1985_v50 }
 0x3f1   :  { %1824 = vst [vmem:[%s3500_s9 + $0x90] sm:$0xff] %v1777_v31  ;;  %v1780_v51 = vadd.f32 %v1987_v47, %v3389_v40 }
 0x3f3   :  { %1825 = vst [vmem:[%s3500_s9 + $0x98] sm:$0xff] %v1780_v51  ;;  %v1988_v36 = vpop.f32.mrb[60].mxu0 }
 0x3f4   :  { %v1989_v2 = vpop.f32.mrb[61].mxu0 }
 0x3f5   :  { %v1990_v32 = vadd.f32 %v1989_v2, %v1988_v36  ;;  %v1991_v49 = vpop.f32.mrb[62].mxu0 }
 0x3f6   :  { %v1992_v5 = vpop.f32.mrb[63].mxu0 }
 0x3f7   :  { %v1785_v1 = vadd.f32 %v1990_v32, %v3389_v40  ;;  %v1993_v57 = vadd.f32 %v1992_v5, %v1991_v49 }
 0x3f9   :  { %1826 = vst [vmem:[%s3500_s9 + $0xa0] sm:$0xff] %v1785_v1  ;;  %v1788_v30 = vadd.f32 %v1993_v57, %v3389_v40 }
 0x3fb   :  { %1827 = vst [vmem:[%s3500_s9 + $0xa8] sm:$0xff] %v1788_v30  ;;  %v1994_v20 = vpop.f32.mrb[64].mxu0 }
 0x3fc   :  { %v1995_v24 = vpop.f32.mrb[65].mxu0 }
 0x3fd   :  { %v1996_v42 = vadd.f32 %v1995_v24, %v1994_v20  ;;  %v1997_v61 = vpop.f32.mrb[66].mxu0 }
 0x3fe   :  { %v1998_v11 = vpop.f32.mrb[67].mxu0 }
 0x3ff   :  { %v1793_v46 = vadd.f32 %v1996_v42, %v3389_v40  ;;  %v1999_v38 = vadd.f32 %v1998_v11, %v1997_v61 }
 0x401   :  { %1828 = vst [vmem:[%s3500_s9 + $0xb0] sm:$0xff] %v1793_v46  ;;  %v1796_v28 = vadd.f32 %v1999_v38, %v3389_v40 }
 0x403   :  { %1829 = vst [vmem:[%s3500_s9 + $0xb8] sm:$0xff] %v1796_v28  ;;  %v2000_v54 = vpop.f32.mrb[68].mxu0 }
 0x404   :  { %v2001_v4 = vpop.f32.mrb[69].mxu0 }
 0x405   :  { %v2002_v12 = vadd.f32 %v2001_v4, %v2000_v54  ;;  %v2003_v3 = vpop.f32.mrb[70].mxu0 }
 0x406   :  { %v2004_v60 = vpop.f32.mrb[71].mxu0 }
 0x407   :  { %v1801_v44 = vadd.f32 %v2002_v12, %v3389_v40 }
 0x409   :  { %1830 = vst [vmem:[%s3500_s9 + $0xc0] sm:$0xff] %v1801_v44 }

</bundles_post_ra>
